<compile_context>
chip_gen: v5e
topology: v5e:2x2
jax: 0.10.0
libtpu: 0.0.40
codegen_flags: <defaults>
</compile_context>

<pallas_src>
import functools
import math

import jax
import jax.numpy as jnp
from jax import lax
from jax.experimental import pallas as pl
from jax.experimental.pallas import tpu as pltpu


# ----------------------------- in-kernel helpers -----------------------------

def _layernorm(x, g, b, eps=1e-5):
    mu = jnp.mean(x, axis=-1, keepdims=True)
    var = jnp.mean((x - mu) ** 2, axis=-1, keepdims=True)
    return (x - mu) * lax.rsqrt(var + eps) * g + b


def _gelu_new(x):
    # NewGELU (tanh approximation), identical to the PyTorch module
    return 0.5 * x * (1.0 + jnp.tanh(math.sqrt(2.0 / math.pi) * (x + 0.044715 * x ** 3)))


def _pick_tile(n, candidates):
    for c in candidates:
        if n % c == 0:
            return c
    return n


def _nbytes(shape, dtype):
    return math.prod(shape) * jnp.dtype(dtype).itemsize


def _compiler_params(semantics, block_bytes):
    # explicit scoped-VMEM budget: double-buffered blocks + headroom, clamped.
    limit = int(min(max(2 * block_bytes + (4 << 20), 16 << 20), 100 << 20))
    return pltpu.CompilerParams(dimension_semantics=semantics,
                                vmem_limit_bytes=limit)


# ------------------------------- Pallas kernels -------------------------------

def qkv_kernel(x_ref, g_ref, b_ref, wa_ref, ba_ref, q_ref, k_ref, v_ref, *, n_head):
    # LN1 + c_attn projection for one (b, q-tile); outputs head-major q/k/v.
    x = x_ref[0]                                   # (TQ, C) f32
    tq, C = x.shape
    hs = C // n_head
    scale = 1.0 / math.sqrt(hs)
    xn = _layernorm(x, g_ref[...], b_ref[...])
    qkv = jnp.dot(xn.astype(wa_ref.dtype), wa_ref[...],
                  preferred_element_type=jnp.float32) + ba_ref[...]
    for h in range(n_head):                        # static unroll; direct per-head stores
        q_ref[0, h] = (qkv[:, h * hs:(h + 1) * hs] * scale).astype(q_ref.dtype)
        k_ref[0, h] = qkv[:, C + h * hs:C + (h + 1) * hs].astype(k_ref.dtype)
        v_ref[0, h] = qkv[:, 2 * C + h * hs:2 * C + (h + 1) * hs].astype(v_ref.dtype)


def attn_kernel(q_ref, k_ref, v_ref, o_ref, m_sc, l_sc, acc_sc):
    # Flash-style causal attention for one (b, head, q-tile); KV tiles stream on axis 3.
    qi = pl.program_id(2)
    ki = pl.program_id(3)
    tq = q_ref.shape[2]
    tk = k_ref.shape[2]
    first_row = qi * tq
    last_row = first_row + tq - 1
    first_col = ki * tk
    last_col = first_col + tk - 1

    @pl.when(ki == 0)
    def _init():
        m_sc[...] = jnp.full(m_sc.shape, -jnp.inf, m_sc.dtype)
        l_sc[...] = jnp.zeros(l_sc.shape, l_sc.dtype)
        acc_sc[...] = jnp.zeros(acc_sc.shape, acc_sc.dtype)

    def _scores():
        # contract last dims -> no explicit k transpose; q is pre-scaled by 1/sqrt(hs)
        return lax.dot_general(q_ref[0, 0], k_ref[0, 0], (((1,), (1,)), ((), ())),
                               preferred_element_type=jnp.float32)   # (TQ, TK)

    def _update(s):
        v = v_ref[0, 0]
        m_prev = m_sc[...]
        m_new = jnp.maximum(m_prev, jnp.max(s, axis=-1, keepdims=True))
        alpha = jnp.exp(m_prev - m_new)
        p = jnp.exp(s - m_new)
        l_sc[...] = alpha * l_sc[...] + jnp.sum(p, axis=-1, keepdims=True)
        acc_sc[...] = alpha * acc_sc[...] + jnp.dot(p.astype(v.dtype), v,
                                                    preferred_element_type=jnp.float32)
        m_sc[...] = m_new

    @pl.when(last_col <= first_row)                # tile fully visible: no mask work
    def _full():
        _update(_scores())

    @pl.when(jnp.logical_and(first_col <= last_row, last_col > first_row))
    def _diag():                                   # tile straddles the causal diagonal
        s = _scores()
        row = first_row + lax.broadcasted_iota(jnp.int32, (tq, tk), 0)
        col = first_col + lax.broadcasted_iota(jnp.int32, (tq, tk), 1)
        _update(jnp.where(col <= row, s, -jnp.inf))

    # tiles with first_col > last_row are fully masked and skipped entirely

    @pl.when(ki == pl.num_programs(3) - 1)
    def _finalize():
        o_ref[0, 0] = (acc_sc[...] *
                       pl.reciprocal(l_sc[...], approx=True)).astype(o_ref.dtype)


def attn_proj_kernel(x_ref, y_ref, wp_ref, bp_ref, o_ref, *, n_head):
    # c_proj of the head-major attention output + residual add.
    x = x_ref[0]                                   # (TQ, C) f32
    tq, C = x.shape
    hs = C // n_head
    acc = jnp.zeros((tq, C), jnp.float32) + bp_ref[...]
    for h in range(n_head):                        # sum_h y_h @ Wp[h*hs:(h+1)*hs] == concat(y) @ Wp
        acc = acc + jnp.dot(y_ref[0, h], wp_ref[h * hs:(h + 1) * hs, :],
                            preferred_element_type=jnp.float32)
    o_ref[0] = x + acc


def mlp_kernel(x_ref, g_ref, b_ref, wfc_ref, bfc_ref, wfp_ref, bfp_ref, o_ref):
    # LN2 + c_fc + NewGELU + c_proj + residual for one (b, q-tile).
    x = x_ref[0]                                   # (TQ, C) f32
    xn = _layernorm(x, g_ref[...], b_ref[...])
    h = jnp.dot(xn.astype(wfc_ref.dtype), wfc_ref[...],
                preferred_element_type=jnp.float32) + bfc_ref[...]
    h = _gelu_new(h)
    o_ref[0] = x + jnp.dot(h.astype(wfp_ref.dtype), wfp_ref[...],
                           preferred_element_type=jnp.float32) + bfp_ref[...]


def head_kernel(x_ref, g_ref, b_ref, wh_ref, o_ref, xn_sc):
    # ln_f computed once per (b, q-tile) into scratch; vocab tiles stream on axis 2.
    @pl.when(pl.program_id(2) == 0)
    def _ln():
        xn_sc[...] = _layernorm(x_ref[0], g_ref[...], b_ref[...]).astype(xn_sc.dtype)
    o_ref[0] = jnp.dot(xn_sc[...], wh_ref[...], preferred_element_type=jnp.float32)


# ------------------------------ Python wrappers ------------------------------

def run_qkv(x, ln_g, ln_b, wa, ba, n_head, tq):
    B, T, C = x.shape
    hs = C // n_head
    dt = wa.dtype
    blk_bytes = (_nbytes((tq, C), jnp.float32) + _nbytes((C, 3 * C), dt)
                 + _nbytes((1, 3 * C), jnp.float32) + 3 * _nbytes((n_head, tq, hs), dt)
                 + _nbytes((tq, 3 * C), jnp.float32))
    out_spec = pl.BlockSpec((1, n_head, tq, hs), lambda b, q: (b, 0, q, 0))
    return pl.pallas_call(
        functools.partial(qkv_kernel, n_head=n_head),
        out_shape=tuple(jax.ShapeDtypeStruct((B, n_head, T, hs), dt) for _ in range(3)),
        grid=(B, T // tq),
        in_specs=[
            pl.BlockSpec((1, tq, C), lambda b, q: (b, q, 0)),
            pl.BlockSpec((1, C), lambda b, q: (0, 0)),
            pl.BlockSpec((1, C), lambda b, q: (0, 0)),
            pl.BlockSpec((C, 3 * C), lambda b, q: (0, 0)),
            pl.BlockSpec((1, 3 * C), lambda b, q: (0, 0)),
        ],
        out_specs=(out_spec, out_spec, out_spec),
        compiler_params=_compiler_params(("parallel", "parallel"), blk_bytes),
    )(x, ln_g, ln_b, wa, ba)


def run_attn(q, k, v, tq, tk):
    B, H, T, hs = q.shape
    dt = q.dtype
    blk_bytes = (2 * _nbytes((tq, hs), dt) + 2 * _nbytes((tk, hs), dt)
                 + _nbytes((tq, hs), jnp.float32) + 2 * _nbytes((tq, 1), jnp.float32)
                 + _nbytes((tq, tk), jnp.float32))
    return pl.pallas_call(
        attn_kernel,
        out_shape=jax.ShapeDtypeStruct((B, H, T, hs), dt),
        grid=(B, H, T // tq, T // tk),
        in_specs=[
            pl.BlockSpec((1, 1, tq, hs), lambda b, h, qi, ki: (b, h, qi, 0)),
            pl.BlockSpec((1, 1, tk, hs), lambda b, h, qi, ki: (b, h, ki, 0)),
            pl.BlockSpec((1, 1, tk, hs), lambda b, h, qi, ki: (b, h, ki, 0)),
        ],
        out_specs=pl.BlockSpec((1, 1, tq, hs), lambda b, h, qi, ki: (b, h, qi, 0)),
        scratch_shapes=[pltpu.VMEM((tq, 1), jnp.float32),
                        pltpu.VMEM((tq, 1), jnp.float32),
                        pltpu.VMEM((tq, hs), jnp.float32)],
        compiler_params=_compiler_params(
            ("parallel", "parallel", "parallel", "arbitrary"), blk_bytes),
    )(q, k, v)


def run_attn_proj(x, y, wp, bp, n_head, tq):
    B, T, C = x.shape
    hs = C // n_head
    blk_bytes = (2 * _nbytes((tq, C), jnp.float32) + _nbytes((n_head, tq, hs), y.dtype)
                 + _nbytes((C, C), wp.dtype) + _nbytes((1, C), jnp.float32))
    return pl.pallas_call(
        functools.partial(attn_proj_kernel, n_head=n_head),
        out_shape=jax.ShapeDtypeStruct((B, T, C), jnp.float32),
        grid=(B, T // tq),
        in_specs=[
            pl.BlockSpec((1, tq, C), lambda b, q: (b, q, 0)),
            pl.BlockSpec((1, n_head, tq, hs), lambda b, q: (b, 0, q, 0)),
            pl.BlockSpec((C, C), lambda b, q: (0, 0)),
            pl.BlockSpec((1, C), lambda b, q: (0, 0)),
        ],
        out_specs=pl.BlockSpec((1, tq, C), lambda b, q: (b, q, 0)),
        compiler_params=_compiler_params(("parallel", "parallel"), blk_bytes),
    )(x, y, wp, bp)


def run_mlp(x, ln_g, ln_b, wfc, bfc, wfp, bfp, tq):
    B, T, C = x.shape
    blk_bytes = (2 * _nbytes((tq, C), jnp.float32) + _nbytes((C, 4 * C), wfc.dtype)
                 + _nbytes((4 * C, C), wfp.dtype) + _nbytes((tq, 4 * C), jnp.float32)
                 + _nbytes((1, 4 * C), jnp.float32))
    return pl.pallas_call(
        mlp_kernel,
        out_shape=jax.ShapeDtypeStruct((B, T, C), jnp.float32),
        grid=(B, T // tq),
        in_specs=[
            pl.BlockSpec((1, tq, C), lambda b, q: (b, q, 0)),
            pl.BlockSpec((1, C), lambda b, q: (0, 0)),
            pl.BlockSpec((1, C), lambda b, q: (0, 0)),
            pl.BlockSpec((C, 4 * C), lambda b, q: (0, 0)),
            pl.BlockSpec((1, 4 * C), lambda b, q: (0, 0)),
            pl.BlockSpec((4 * C, C), lambda b, q: (0, 0)),
            pl.BlockSpec((1, C), lambda b, q: (0, 0)),
        ],
        out_specs=pl.BlockSpec((1, tq, C), lambda b, q: (b, q, 0)),
        compiler_params=_compiler_params(("parallel", "parallel"), blk_bytes),
    )(x, ln_g, ln_b, wfc, bfc, wfp, bfp)


def run_head(x, lnf_g, lnf_b, w_head, tq):
    B, T, C = x.shape
    V = w_head.shape[1]
    v_pad = ((V + 127) // 128) * 128               # lane-dense (padded) vocab
    if v_pad != V:
        w_head = jnp.pad(w_head, ((0, 0), (0, v_pad - V)))
    tv = _pick_tile(v_pad, (1024, 512, 256, 128))
    blk_bytes = (_nbytes((tq, C), jnp.float32) + _nbytes((C, tv), w_head.dtype)
                 + _nbytes((tq, tv), jnp.float32) + _nbytes((tq, C), w_head.dtype))
    logits = pl.pallas_call(
        head_kernel,
        out_shape=jax.ShapeDtypeStruct((B, T, v_pad), jnp.float32),
        grid=(B, T // tq, v_pad // tv),
        in_specs=[
            pl.BlockSpec((1, tq, C), lambda b, q, vi: (b, q, 0)),
            pl.BlockSpec((1, C), lambda b, q, vi: (0, 0)),
            pl.BlockSpec((1, C), lambda b, q, vi: (0, 0)),
            pl.BlockSpec((C, tv), lambda b, q, vi: (0, vi)),
        ],
        out_specs=pl.BlockSpec((1, tq, tv), lambda b, q, vi: (b, q, vi)),
        scratch_shapes=[pltpu.VMEM((tq, C), w_head.dtype)],
        compiler_params=_compiler_params(("parallel", "parallel", "arbitrary"), blk_bytes),
    )(x, lnf_g, lnf_b, w_head)
    return logits if v_pad == V else logits[:, :, :V]


def transformer_forward(idx, params, *, n_head, compute_dtype=jnp.float32):
    # embedding gather + position embedding: plain-JAX glue (runs inside the same jit)
    B, T = idx.shape
    x = (jnp.take(params["wte"], idx, axis=0) + params["wpe"][:T][None]).astype(jnp.float32)
    tq = _pick_tile(T, (256, 128))
    cd = compute_dtype
    for (g1, b1, wa, ba, wp, bp, g2, b2, wf, bf, wfp, bfp) in params["blocks"]:
        q, k, v = run_qkv(x, g1, b1, wa.astype(cd), ba, n_head, tq)
        y = run_attn(q, k, v, tq, tq)
        x = run_attn_proj(x, y, wp.astype(cd), bp, n_head, tq)
        x = run_mlp(x, g2, b2, wf.astype(cd), bf, wfp.astype(cd), bfp, tq)
    return run_head(x, params["lnf_g"], params["lnf_b"],
                    params["w_head"].astype(cd), tq)


# ------------------------------ param construction ---------------------------

def init_params(key, vocab_size, block_size, n_embd, n_layer):
    ks = iter(jax.random.split(key, 8 + 16 * n_layer))
    nrm = lambda shape, s=0.02: (s * jax.random.normal(next(ks), shape)).astype(jnp.float32)
    params = {
        "wte": nrm((vocab_size, n_embd)),
        "wpe": nrm((block_size, n_embd)),
        "lnf_g": jnp.ones((1, n_embd), jnp.float32),
        "lnf_b": jnp.zeros((1, n_embd), jnp.float32),
        "w_head": nrm((n_embd, vocab_size)),
        "blocks": [],
    }
    for _ in range(n_layer):
        blk = (
            jnp.ones((1, n_embd), jnp.float32),           # ln1 gamma
            jnp.zeros((1, n_embd), jnp.float32),          # ln1 beta
            nrm((n_embd, 3 * n_embd)),                    # c_attn W  (in, out)
            nrm((1, 3 * n_embd)),                         # c_attn b
            nrm((n_embd, n_embd)),                        # c_proj W
            nrm((1, n_embd)),                             # c_proj b
            jnp.ones((1, n_embd), jnp.float32),           # ln2 gamma
            jnp.zeros((1, n_embd), jnp.float32),          # ln2 beta
            nrm((n_embd, 4 * n_embd)),                    # mlp c_fc W
            nrm((1, 4 * n_embd)),                         # mlp c_fc b
            nrm((4 * n_embd, n_embd)),                    # mlp c_proj W
            nrm((1, n_embd)),                             # mlp c_proj b
        )
        params["blocks"].append(blk)
    return params


# ------------------------------ pure-JAX reference ----------------------------

def reference_forward(idx, params, n_head):
    B, T = idx.shape
    x = jnp.take(params["wte"], idx, axis=0) + params["wpe"][:T][None]
    for (g1, b1, wa, ba, wp, bp, g2, b2, wf, bf, wfp, bfp) in params["blocks"]:
        Bn, Tn, C = x.shape
        hs = C // n_head
        xn = _layernorm(x, g1, b1)
        qkv = xn @ wa + ba
        q, k, v = jnp.split(qkv, 3, axis=-1)
        q = q.reshape(Bn, Tn, n_head, hs).transpose(0, 2, 1, 3)
        k = k.reshape(Bn, Tn, n_head, hs).transpose(0, 2, 1, 3)
        v = v.reshape(Bn, Tn, n_head, hs).transpose(0, 2, 1, 3)
        att = jnp.einsum("bhqd,bhkd->bhqk", q, k) / math.sqrt(hs)
        mask = jnp.tril(jnp.ones((Tn, Tn), bool))
        att = jnp.where(mask, att, -jnp.inf)
        att = jax.nn.softmax(att, axis=-1)
        y = jnp.einsum("bhqk,bhkd->bhqd", att, v).transpose(0, 2, 1, 3).reshape(Bn, Tn, C)
        x = x + (y @ wp + bp)
        xn2 = _layernorm(x, g2, b2)
        x = x + (_gelu_new(xn2 @ wf + bf) @ wfp + bfp)
    xn = _layernorm(x, params["lnf_g"], params["lnf_b"])
    return xn @ params["w_head"]


# ------------------------------------ main ------------------------------------

if __name__ == "__main__":
    vocab_size, block_size = 64, 16
    n_embd, n_head, n_layer = 32, 4, 2
    B, T = 2, 8

    key = jax.random.PRNGKey(0)
    k_idx, k_par = jax.random.split(key)
    params = init_params(k_par, vocab_size, block_size, n_embd, n_layer)
    idx = jax.random.randint(k_idx, (B, T), 0, vocab_size, dtype=jnp.int32)

    # f32 matmul path (matches the PyTorch f32 module numerics); whole forward jitted.
    fwd_f32 = jax.jit(functools.partial(transformer_forward,
                                        n_head=n_head, compute_dtype=jnp.float32))
    logits = jax.block_until_ready(fwd_f32(idx, params))
    ref = reference_forward(idx, params, n_head)
    assert logits.shape == (B, T, vocab_size)
    assert jnp.allclose(logits, ref, rtol=2e-3, atol=2e-3), "mismatch vs pure-JAX reference"

    # bf16 matmul path (production config for v6e/v7x: bf16 MXU inputs, f32 accumulation,
    # f32 layernorm/softmax/residuals). Sanity-run only.
    fwd_bf16 = jax.jit(functools.partial(transformer_forward,
                                         n_head=n_head, compute_dtype=jnp.bfloat16))
    logits_bf16 = jax.block_until_ready(fwd_bf16(idx, params))
    assert logits_bf16.shape == (B, T, vocab_size)
    assert bool(jnp.isfinite(logits_bf16).all())

    # TODO(synk): cross-entropy loss path (targets) is not implemented in-kernel;
    # the module's logits-only forward (targets=None) is what is reproduced here.
    print("KERNEL_OK")
</pallas_src>

<mosaic_0001>
module attributes {stable_mosaic.version = 11 : i64} {
  func.func @attn_proj_kernel(%arg0: i32, %arg1: i32, %arg2: memref<1x8x32xf32, #tpu.memory_space<vmem>>, %arg3: memref<1x4x8x8xf32, #tpu.memory_space<vmem>>, %arg4: memref<32x32xf32, #tpu.memory_space<vmem>>, %arg5: memref<1x32xf32, #tpu.memory_space<vmem>>, %arg6: memref<1x8x32xf32, #tpu.memory_space<vmem>>) attributes {dimension_semantics = [#tpu.dimension_semantics<parallel>, #tpu.dimension_semantics<parallel>], iteration_bounds = array<i64: 2, 1>, scalar_prefetch = 0 : i64, scratch_operands = 0 : i64, tpu.core_type = #tpu.core_type<tc>, window_params = [{transform_indices = @transform_0, window_bounds = array<i64: 1, 8, 32>}, {transform_indices = @transform_1, window_bounds = array<i64: 1, 4, 8, 8>}, {pipeline_mode = #tpu.pipeline_mode<synchronous>, transform_indices = @transform_2, window_bounds = array<i64: 32, 32>}, {pipeline_mode = #tpu.pipeline_mode<synchronous>, transform_indices = @transform_3, window_bounds = array<i64: 1, 32>}, {transform_indices = @transform_4, window_bounds = array<i64: 1, 8, 32>}]} {
    %c0 = arith.constant 0 : index
    %c0_0 = arith.constant 0 : index
    %c0_1 = arith.constant 0 : index
    %0 = vector.load %arg2[%c0, %c0_0, %c0_1] : memref<1x8x32xf32, #tpu.memory_space<vmem>>, vector<1x8x32xf32>
    %1 = vector.shape_cast %0 : vector<1x8x32xf32> to vector<8x32xf32>
    %cst = arith.constant 0.000000e+00 : f32
    %2 = vector.broadcast %cst : f32 to vector<8x32xf32>
    %c0_2 = arith.constant 0 : index
    %c0_3 = arith.constant 0 : index
    %3 = vector.load %arg5[%c0_2, %c0_3] : memref<1x32xf32, #tpu.memory_space<vmem>>, vector<1x32xf32>
    %4 = vector.broadcast %3 : vector<1x32xf32> to vector<8x32xf32>
    %5 = arith.addf %2, %4 : vector<8x32xf32>
    %c0_4 = arith.constant 0 : index
    %c0_5 = arith.constant 0 : index
    %c0_6 = arith.constant 0 : index
    %c0_7 = arith.constant 0 : index
    %6 = vector.load %arg3[%c0_4, %c0_5, %c0_6, %c0_7] : memref<1x4x8x8xf32, #tpu.memory_space<vmem>>, vector<1x1x8x8xf32>
    %7 = vector.shape_cast %6 : vector<1x1x8x8xf32> to vector<8x8xf32>
    %c0_8 = arith.constant 0 : index
    %c0_9 = arith.constant 0 : index
    %8 = vector.load %arg4[%c0_8, %c0_9] : memref<32x32xf32, #tpu.memory_space<vmem>>, vector<8x32xf32>
    %cst_10 = arith.constant dense<0.000000e+00> : vector<8x32xf32>
    %9 = tpu.matmul %7, %8, %cst_10 {dimension_numbers = #tpu.dot_dimension_numbers<[1], [0], [0], [1], [0, 0, 1, 1], [], []>} : vector<8x8xf32>, vector<8x32xf32>, vector<8x32xf32> -> vector<8x32xf32>
    %10 = arith.addf %5, %9 : vector<8x32xf32>
    %c0_11 = arith.constant 0 : index
    %c1 = arith.constant 1 : index
    %c0_12 = arith.constant 0 : index
    %c0_13 = arith.constant 0 : index
    %11 = vector.load %arg3[%c0_11, %c1, %c0_12, %c0_13] : memref<1x4x8x8xf32, #tpu.memory_space<vmem>>, vector<1x1x8x8xf32>
    %12 = vector.shape_cast %11 : vector<1x1x8x8xf32> to vector<8x8xf32>
    %c8 = arith.constant 8 : index
    %c0_14 = arith.constant 0 : index
    %13 = vector.load %arg4[%c8, %c0_14] : memref<32x32xf32, #tpu.memory_space<vmem>>, vector<8x32xf32>
    %cst_15 = arith.constant dense<0.000000e+00> : vector<8x32xf32>
    %14 = tpu.matmul %12, %13, %cst_15 {dimension_numbers = #tpu.dot_dimension_numbers<[1], [0], [0], [1], [0, 0, 1, 1], [], []>} : vector<8x8xf32>, vector<8x32xf32>, vector<8x32xf32> -> vector<8x32xf32>
    %15 = arith.addf %10, %14 : vector<8x32xf32>
    %c0_16 = arith.constant 0 : index
    %c2 = arith.constant 2 : index
    %c0_17 = arith.constant 0 : index
    %c0_18 = arith.constant 0 : index
    %16 = vector.load %arg3[%c0_16, %c2, %c0_17, %c0_18] : memref<1x4x8x8xf32, #tpu.memory_space<vmem>>, vector<1x1x8x8xf32>
    %17 = vector.shape_cast %16 : vector<1x1x8x8xf32> to vector<8x8xf32>
    %c16 = arith.constant 16 : index
    %c0_19 = arith.constant 0 : index
    %18 = vector.load %arg4[%c16, %c0_19] : memref<32x32xf32, #tpu.memory_space<vmem>>, vector<8x32xf32>
    %cst_20 = arith.constant dense<0.000000e+00> : vector<8x32xf32>
    %19 = tpu.matmul %17, %18, %cst_20 {dimension_numbers = #tpu.dot_dimension_numbers<[1], [0], [0], [1], [0, 0, 1, 1], [], []>} : vector<8x8xf32>, vector<8x32xf32>, vector<8x32xf32> -> vector<8x32xf32>
    %20 = arith.addf %15, %19 : vector<8x32xf32>
    %c0_21 = arith.constant 0 : index
    %c3 = arith.constant 3 : index
    %c0_22 = arith.constant 0 : index
    %c0_23 = arith.constant 0 : index
    %21 = vector.load %arg3[%c0_21, %c3, %c0_22, %c0_23] : memref<1x4x8x8xf32, #tpu.memory_space<vmem>>, vector<1x1x8x8xf32>
    %22 = vector.shape_cast %21 : vector<1x1x8x8xf32> to vector<8x8xf32>
    %c24 = arith.constant 24 : index
    %c0_24 = arith.constant 0 : index
    %23 = vector.load %arg4[%c24, %c0_24] : memref<32x32xf32, #tpu.memory_space<vmem>>, vector<8x32xf32>
    %cst_25 = arith.constant dense<0.000000e+00> : vector<8x32xf32>
    %24 = tpu.matmul %22, %23, %cst_25 {dimension_numbers = #tpu.dot_dimension_numbers<[1], [0], [0], [1], [0, 0, 1, 1], [], []>} : vector<8x8xf32>, vector<8x32xf32>, vector<8x32xf32> -> vector<8x32xf32>
    %25 = arith.addf %20, %24 : vector<8x32xf32>
    %26 = arith.addf %1, %25 : vector<8x32xf32>
    %c0_26 = arith.constant 0 : index
    %c0_27 = arith.constant 0 : index
    %c0_28 = arith.constant 0 : index
    %27 = vector.load %arg6[%c0_26, %c0_27, %c0_28] : memref<1x8x32xf32, #tpu.memory_space<vmem>>, vector<1x8x32xf32>
    %28 = vector.shape_cast %27 : vector<1x8x32xf32> to vector<8x32xf32>
    %29 = vector.shape_cast %26 : vector<8x32xf32> to vector<1x8x32xf32>
    tpu.vector_store %arg6[%c0_26, %c0_27, %c0_28], %29 {strides = array<i32>} : memref<1x8x32xf32, #tpu.memory_space<vmem>>, vector<1x8x32xf32>,
    return
  }
  func.func @transform_0(%arg0: i32, %arg1: i32) -> (i32, i32, i32) {
    %c0_i32 = arith.constant 0 : i32
    %c0_i32_0 = arith.constant 0 : i32
    return %arg0, %arg1, %c0_i32 : i32, i32, i32
  }
  func.func @transform_1(%arg0: i32, %arg1: i32) -> (i32, i32, i32, i32) {
    %c0_i32 = arith.constant 0 : i32
    %c0_i32_0 = arith.constant 0 : i32
    %c0_i32_1 = arith.constant 0 : i32
    return %arg0, %c0_i32, %arg1, %c0_i32_0 : i32, i32, i32, i32
  }
  func.func @transform_2(%arg0: i32, %arg1: i32) -> (i32, i32) {
    %c0_i32 = arith.constant 0 : i32
    %c0_i32_0 = arith.constant 0 : i32
    %c0_i32_1 = arith.constant 0 : i32
    return %c0_i32, %c0_i32_0 : i32, i32
  }
  func.func @transform_3(%arg0: i32, %arg1: i32) -> (i32, i32) {
    %c0_i32 = arith.constant 0 : i32
    %c0_i32_0 = arith.constant 0 : i32
    %c0_i32_1 = arith.constant 0 : i32
    return %c0_i32, %c0_i32_0 : i32, i32
  }
  func.func @transform_4(%arg0: i32, %arg1: i32) -> (i32, i32, i32) {
    %c0_i32 = arith.constant 0 : i32
    %c0_i32_0 = arith.constant 0 : i32
    return %arg0, %arg1, %c0_i32 : i32, i32, i32
  }
}

module attributes {stable_mosaic.version = 11 : i64} {
  func.func @mlp_kernel(%arg0: i32, %arg1: i32, %arg2: memref<1x8x32xf32, #tpu.memory_space<vmem>>, %arg3: memref<1x32xf32, #tpu.memory_space<vmem>>, %arg4: memref<1x32xf32, #tpu.memory_space<vmem>>, %arg5: memref<32x128xf32, #tpu.memory_space<vmem>>, %arg6: memref<1x128xf32, #tpu.memory_space<vmem>>, %arg7: memref<128x32xf32, #tpu.memory_space<vmem>>, %arg8: memref<1x32xf32, #tpu.memory_space<vmem>>, %arg9: memref<1x8x32xf32, #tpu.memory_space<vmem>>) attributes {dimension_semantics = [#tpu.dimension_semantics<parallel>, #tpu.dimension_semantics<parallel>], iteration_bounds = array<i64: 2, 1>, scalar_prefetch = 0 : i64, scratch_operands = 0 : i64, tpu.core_type = #tpu.core_type<tc>, window_params = [{transform_indices = @transform_0, window_bounds = array<i64: 1, 8, 32>}, {pipeline_mode = #tpu.pipeline_mode<synchronous>, transform_indices = @transform_1, window_bounds = array<i64: 1, 32>}, {pipeline_mode = #tpu.pipeline_mode<synchronous>, transform_indices = @transform_2, window_bounds = array<i64: 1, 32>}, {pipeline_mode = #tpu.pipeline_mode<synchronous>, transform_indices = @transform_3, window_bounds = array<i64: 32, 128>}, {pipeline_mode = #tpu.pipeline_mode<synchronous>, transform_indices = @transform_4, window_bounds = array<i64: 1, 128>}, {pipeline_mode = #tpu.pipeline_mode<synchronous>, transform_indices = @transform_5, window_bounds = array<i64: 128, 32>}, {pipeline_mode = #tpu.pipeline_mode<synchronous>, transform_indices = @transform_6, window_bounds = array<i64: 1, 32>}, {transform_indices = @transform_7, window_bounds = array<i64: 1, 8, 32>}]} {
    %c0 = arith.constant 0 : index
    %c0_0 = arith.constant 0 : index
    %c0_1 = arith.constant 0 : index
    %0 = vector.load %arg2[%c0, %c0_0, %c0_1] : memref<1x8x32xf32, #tpu.memory_space<vmem>>, vector<1x8x32xf32>
    %1 = vector.shape_cast %0 : vector<1x8x32xf32> to vector<8x32xf32>
    %c0_2 = arith.constant 0 : index
    %c0_3 = arith.constant 0 : index
    %2 = vector.load %arg3[%c0_2, %c0_3] : memref<1x32xf32, #tpu.memory_space<vmem>>, vector<1x32xf32>
    %c0_4 = arith.constant 0 : index
    %c0_5 = arith.constant 0 : index
    %3 = vector.load %arg4[%c0_4, %c0_5] : memref<1x32xf32, #tpu.memory_space<vmem>>, vector<1x32xf32>
    %cst = arith.constant dense<0.000000e+00> : vector<8xf32>
    %4 = vector.multi_reduction <add>, %1, %cst [1] : vector<8x32xf32> to vector<8xf32>
    %5 = vector.shape_cast %4 : vector<8xf32> to vector<8x1xf32>
    %cst_6 = arith.constant 3.200000e+01 : f32
    %6 = vector.broadcast %cst_6 : f32 to vector<8x1xf32>
    %7 = arith.divf %5, %6 : vector<8x1xf32>
    %8 = vector.broadcast %7 : vector<8x1xf32> to vector<8x32xf32>
    %9 = arith.subf %1, %8 : vector<8x32xf32>
    %10 = arith.mulf %9, %9 : vector<8x32xf32>
    %cst_7 = arith.constant dense<0.000000e+00> : vector<8xf32>
    %11 = vector.multi_reduction <add>, %10, %cst_7 [1] : vector<8x32xf32> to vector<8xf32>
    %12 = vector.shape_cast %11 : vector<8xf32> to vector<8x1xf32>
    %cst_8 = arith.constant 3.200000e+01 : f32
    %13 = vector.broadcast %cst_8 : f32 to vector<8x1xf32>
    %14 = arith.divf %12, %13 : vector<8x1xf32>
    %15 = vector.broadcast %7 : vector<8x1xf32> to vector<8x32xf32>
    %16 = arith.subf %1, %15 : vector<8x32xf32>
    %cst_9 = arith.constant 9.99999974E-6 : f32
    %17 = vector.broadcast %cst_9 : f32 to vector<8x1xf32>
    %18 = arith.addf %14, %17 : vector<8x1xf32>
    %19 = math.rsqrt %18 : vector<8x1xf32>
    %20 = vector.broadcast %19 : vector<8x1xf32> to vector<8x32xf32>
    %21 = arith.mulf %16, %20 : vector<8x32xf32>
    %22 = vector.broadcast %2 : vector<1x32xf32> to vector<8x32xf32>
    %23 = arith.mulf %21, %22 : vector<8x32xf32>
    %24 = vector.broadcast %3 : vector<1x32xf32> to vector<8x32xf32>
    %25 = arith.addf %23, %24 : vector<8x32xf32>
    %c0_10 = arith.constant 0 : index
    %c0_11 = arith.constant 0 : index
    %26 = vector.load %arg5[%c0_10, %c0_11] : memref<32x128xf32, #tpu.memory_space<vmem>>, vector<32x128xf32>
    %cst_12 = arith.constant dense<0.000000e+00> : vector<8x128xf32>
    %27 = tpu.matmul %25, %26, %cst_12 {dimension_numbers = #tpu.dot_dimension_numbers<[1], [0], [0], [1], [0, 0, 1, 1], [], []>} : vector<8x32xf32>, vector<32x128xf32>, vector<8x128xf32> -> vector<8x128xf32>
    %c0_13 = arith.constant 0 : index
    %c0_14 = arith.constant 0 : index
    %28 = vector.load %arg6[%c0_13, %c0_14] : memref<1x128xf32, #tpu.memory_space<vmem>>, vector<1x128xf32>
    %29 = vector.broadcast %28 : vector<1x128xf32> to vector<8x128xf32>
    %30 = arith.addf %27, %29 : vector<8x128xf32>
    %cst_15 = arith.constant 5.000000e-01 : f32
    %31 = vector.broadcast %cst_15 : f32 to vector<8x128xf32>
    %32 = arith.mulf %31, %30 : vector<8x128xf32>
    %33 = arith.mulf %30, %30 : vector<8x128xf32>
    %34 = arith.mulf %30, %33 : vector<8x128xf32>
    %cst_16 = arith.constant 4.471500e-02 : f32
    %35 = vector.broadcast %cst_16 : f32 to vector<8x128xf32>
    %36 = arith.mulf %35, %34 : vector<8x128xf32>
    %37 = arith.addf %30, %36 : vector<8x128xf32>
    %cst_17 = arith.constant 0.797884583 : f32
    %38 = vector.broadcast %cst_17 : f32 to vector<8x128xf32>
    %39 = arith.mulf %38, %37 : vector<8x128xf32>
    %40 = math.tanh %39 : vector<8x128xf32>
    %cst_18 = arith.constant 1.000000e+00 : f32
    %41 = vector.broadcast %cst_18 : f32 to vector<8x128xf32>
    %42 = arith.addf %41, %40 : vector<8x128xf32>
    %43 = arith.mulf %32, %42 : vector<8x128xf32>
    %c0_19 = arith.constant 0 : index
    %c0_20 = arith.constant 0 : index
    %44 = vector.load %arg7[%c0_19, %c0_20] : memref<128x32xf32, #tpu.memory_space<vmem>>, vector<128x32xf32>
    %cst_21 = arith.constant dense<0.000000e+00> : vector<8x32xf32>
    %45 = tpu.matmul %43, %44, %cst_21 {dimension_numbers = #tpu.dot_dimension_numbers<[1], [0], [0], [1], [0, 0, 1, 1], [], []>} : vector<8x128xf32>, vector<128x32xf32>, vector<8x32xf32> -> vector<8x32xf32>
    %46 = arith.addf %1, %45 : vector<8x32xf32>
    %c0_22 = arith.constant 0 : index
    %c0_23 = arith.constant 0 : index
    %47 = vector.load %arg8[%c0_22, %c0_23] : memref<1x32xf32, #tpu.memory_space<vmem>>, vector<1x32xf32>
    %48 = vector.broadcast %47 : vector<1x32xf32> to vector<8x32xf32>
    %49 = arith.addf %46, %48 : vector<8x32xf32>
    %c0_24 = arith.constant 0 : index
    %c0_25 = arith.constant 0 : index
    %c0_26 = arith.constant 0 : index
    %50 = vector.load %arg9[%c0_24, %c0_25, %c0_26] : memref<1x8x32xf32, #tpu.memory_space<vmem>>, vector<1x8x32xf32>
    %51 = vector.shape_cast %50 : vector<1x8x32xf32> to vector<8x32xf32>
    %52 = vector.shape_cast %49 : vector<8x32xf32> to vector<1x8x32xf32>
    tpu.vector_store %arg9[%c0_24, %c0_25, %c0_26], %52 {strides = array<i32>} : memref<1x8x32xf32, #tpu.memory_space<vmem>>, vector<1x8x32xf32>,
    return
  }
  func.func @transform_0(%arg0: i32, %arg1: i32) -> (i32, i32, i32) {
    %c0_i32 = arith.constant 0 : i32
    %c0_i32_0 = arith.constant 0 : i32
    return %arg0, %arg1, %c0_i32 : i32, i32, i32
  }
  func.func @transform_1(%arg0: i32, %arg1: i32) -> (i32, i32) {
    %c0_i32 = arith.constant 0 : i32
    %c0_i32_0 = arith.constant 0 : i32
    %c0_i32_1 = arith.constant 0 : i32
    return %c0_i32, %c0_i32_0 : i32, i32
  }
  func.func @transform_2(%arg0: i32, %arg1: i32) -> (i32, i32) {
    %c0_i32 = arith.constant 0 : i32
    %c0_i32_0 = arith.constant 0 : i32
    %c0_i32_1 = arith.constant 0 : i32
    return %c0_i32, %c0_i32_0 : i32, i32
  }
  func.func @transform_3(%arg0: i32, %arg1: i32) -> (i32, i32) {
    %c0_i32 = arith.constant 0 : i32
    %c0_i32_0 = arith.constant 0 : i32
    %c0_i32_1 = arith.constant 0 : i32
    return %c0_i32, %c0_i32_0 : i32, i32
  }
  func.func @transform_4(%arg0: i32, %arg1: i32) -> (i32, i32) {
    %c0_i32 = arith.constant 0 : i32
    %c0_i32_0 = arith.constant 0 : i32
    %c0_i32_1 = arith.constant 0 : i32
    return %c0_i32, %c0_i32_0 : i32, i32
  }
  func.func @transform_5(%arg0: i32, %arg1: i32) -> (i32, i32) {
    %c0_i32 = arith.constant 0 : i32
    %c0_i32_0 = arith.constant 0 : i32
    %c0_i32_1 = arith.constant 0 : i32
    return %c0_i32, %c0_i32_0 : i32, i32
  }
  func.func @transform_6(%arg0: i32, %arg1: i32) -> (i32, i32) {
    %c0_i32 = arith.constant 0 : i32
    %c0_i32_0 = arith.constant 0 : i32
    %c0_i32_1 = arith.constant 0 : i32
    return %c0_i32, %c0_i32_0 : i32, i32
  }
  func.func @transform_7(%arg0: i32, %arg1: i32) -> (i32, i32, i32) {
    %c0_i32 = arith.constant 0 : i32
    %c0_i32_0 = arith.constant 0 : i32
    return %arg0, %arg1, %c0_i32 : i32, i32, i32
  }
}

module attributes {stable_mosaic.version = 11 : i64} {
  func.func @attn_kernel(%arg0: i32, %arg1: i32, %arg2: i32, %arg3: i32, %arg4: memref<1x1x8x8xf32, #tpu.memory_space<vmem>>, %arg5: memref<1x1x8x8xf32, #tpu.memory_space<vmem>>, %arg6: memref<1x1x8x8xf32, #tpu.memory_space<vmem>>, %arg7: memref<1x1x8x8xf32, #tpu.memory_space<vmem>>, %arg8: memref<8x1xf32, #tpu.memory_space<vmem>>, %arg9: memref<8x1xf32, #tpu.memory_space<vmem>>, %arg10: memref<8x8xf32, #tpu.memory_space<vmem>>) attributes {dimension_semantics = [#tpu.dimension_semantics<parallel>, #tpu.dimension_semantics<parallel>, #tpu.dimension_semantics<parallel>, #tpu.dimension_semantics<arbitrary>], iteration_bounds = array<i64: 2, 4, 1, 1>, scalar_prefetch = 0 : i64, scratch_operands = 3 : i64, tpu.core_type = #tpu.core_type<tc>, window_params = [{transform_indices = @transform_0, window_bounds = array<i64: 1, 1, 8, 8>}, {transform_indices = @transform_1, window_bounds = array<i64: 1, 1, 8, 8>}, {transform_indices = @transform_2, window_bounds = array<i64: 1, 1, 8, 8>}, {transform_indices = @transform_3, window_bounds = array<i64: 1, 1, 8, 8>}]} {
    %c8_i32 = arith.constant 8 : i32
    %0 = arith.muli %arg2, %c8_i32 : i32
    %c8_i32_0 = arith.constant 8 : i32
    %1 = arith.addi %0, %c8_i32_0 : i32
    %c1_i32 = arith.constant 1 : i32
    %2 = arith.subi %1, %c1_i32 : i32
    %c8_i32_1 = arith.constant 8 : i32
    %3 = arith.muli %arg3, %c8_i32_1 : i32
    %c8_i32_2 = arith.constant 8 : i32
    %4 = arith.addi %3, %c8_i32_2 : i32
    %c1_i32_3 = arith.constant 1 : i32
    %5 = arith.subi %4, %c1_i32_3 : i32
    %c0_i32 = arith.constant 0 : i32
    %6 = arith.cmpi eq, %arg3, %c0_i32 : i32
    %7 = arith.extui %6 : i1 to i32
    %c0_i32_4 = arith.constant 0 : i32
    %8 = arith.cmpi ne, %7, %c0_i32_4 : i32
    scf.if %8 {
      %cst = arith.constant 0xFF800000 : f32
      %20 = vector.broadcast %cst : f32 to vector<8x1xf32>
      %c0 = arith.constant 0 : index
      %c0_9 = arith.constant 0 : index
      %21 = vector.load %arg8[%c0, %c0_9] : memref<8x1xf32, #tpu.memory_space<vmem>>, vector<8x1xf32>
      tpu.vector_store %arg8[%c0, %c0_9], %20 {strides = array<i32>} : memref<8x1xf32, #tpu.memory_space<vmem>>, vector<8x1xf32>,
      %cst_10 = arith.constant 0.000000e+00 : f32
      %22 = vector.broadcast %cst_10 : f32 to vector<8x1xf32>
      %c0_11 = arith.constant 0 : index
      %c0_12 = arith.constant 0 : index
      %23 = vector.load %arg9[%c0_11, %c0_12] : memref<8x1xf32, #tpu.memory_space<vmem>>, vector<8x1xf32>
      tpu.vector_store %arg9[%c0_11, %c0_12], %22 {strides = array<i32>} : memref<8x1xf32, #tpu.memory_space<vmem>>, vector<8x1xf32>,
      %cst_13 = arith.constant 0.000000e+00 : f32
      %24 = vector.broadcast %cst_13 : f32 to vector<8x8xf32>
      %c0_14 = arith.constant 0 : index
      %c0_15 = arith.constant 0 : index
      %25 = vector.load %arg10[%c0_14, %c0_15] : memref<8x8xf32, #tpu.memory_space<vmem>>, vector<8x8xf32>
      tpu.vector_store %arg10[%c0_14, %c0_15], %24 {strides = array<i32>} : memref<8x8xf32, #tpu.memory_space<vmem>>, vector<8x8xf32>,
    } else {
    }
    %9 = arith.cmpi sle, %5, %0 : i32
    %10 = arith.extui %9 : i1 to i32
    %c0_i32_5 = arith.constant 0 : i32
    %11 = arith.cmpi ne, %10, %c0_i32_5 : i32
    scf.if %11 {
      %c0 = arith.constant 0 : index
      %c0_9 = arith.constant 0 : index
      %c0_10 = arith.constant 0 : index
      %c0_11 = arith.constant 0 : index
      %20 = vector.load %arg4[%c0, %c0_9, %c0_10, %c0_11] : memref<1x1x8x8xf32, #tpu.memory_space<vmem>>, vector<1x1x8x8xf32>
      %21 = vector.shape_cast %20 : vector<1x1x8x8xf32> to vector<8x8xf32>
      %c0_12 = arith.constant 0 : index
      %c0_13 = arith.constant 0 : index
      %c0_14 = arith.constant 0 : index
      %c0_15 = arith.constant 0 : index
      %22 = vector.load %arg5[%c0_12, %c0_13, %c0_14, %c0_15] : memref<1x1x8x8xf32, #tpu.memory_space<vmem>>, vector<1x1x8x8xf32>
      %23 = vector.shape_cast %22 : vector<1x1x8x8xf32> to vector<8x8xf32>
      %cst = arith.constant dense<0.000000e+00> : vector<8x8xf32>
      %24 = tpu.matmul %21, %23, %cst {dimension_numbers = #tpu.dot_dimension_numbers<[1], [1], [0], [0], [0, 0, 1, 0], [], []>} : vector<8x8xf32>, vector<8x8xf32>, vector<8x8xf32> -> vector<8x8xf32>
      %c0_16 = arith.constant 0 : index
      %c0_17 = arith.constant 0 : index
      %c0_18 = arith.constant 0 : index
      %c0_19 = arith.constant 0 : index
      %25 = vector.load %arg6[%c0_16, %c0_17, %c0_18, %c0_19] : memref<1x1x8x8xf32, #tpu.memory_space<vmem>>, vector<1x1x8x8xf32>
      %26 = vector.shape_cast %25 : vector<1x1x8x8xf32> to vector<8x8xf32>
      %c0_20 = arith.constant 0 : index
      %c0_21 = arith.constant 0 : index
      %27 = vector.load %arg8[%c0_20, %c0_21] : memref<8x1xf32, #tpu.memory_space<vmem>>, vector<8x1xf32>
      %cst_22 = arith.constant dense<0xFF800000> : vector<8xf32>
      %28 = vector.multi_reduction <maximumf>, %24, %cst_22 [1] : vector<8x8xf32> to vector<8xf32>
      %29 = vector.shape_cast %28 : vector<8xf32> to vector<8x1xf32>
      %30 = arith.maximumf %27, %29 : vector<8x1xf32>
      %31 = arith.subf %27, %30 : vector<8x1xf32>
      %32 = math.exp %31 : vector<8x1xf32>
      %33 = vector.broadcast %30 : vector<8x1xf32> to vector<8x8xf32>
      %34 = arith.subf %24, %33 : vector<8x8xf32>
      %35 = math.exp %34 : vector<8x8xf32>
      %c0_23 = arith.constant 0 : index
      %c0_24 = arith.constant 0 : index
      %36 = vector.load %arg9[%c0_23, %c0_24] : memref<8x1xf32, #tpu.memory_space<vmem>>, vector<8x1xf32>
      %37 = arith.mulf %32, %36 : vector<8x1xf32>
      %cst_25 = arith.constant dense<0.000000e+00> : vector<8xf32>
      %38 = vector.multi_reduction <add>, %35, %cst_25 [1] : vector<8x8xf32> to vector<8xf32>
      %39 = vector.shape_cast %38 : vector<8xf32> to vector<8x1xf32>
      %40 = arith.addf %37, %39 : vector<8x1xf32>
      %c0_26 = arith.constant 0 : index
      %c0_27 = arith.constant 0 : index
      %41 = vector.load %arg9[%c0_26, %c0_27] : memref<8x1xf32, #tpu.memory_space<vmem>>, vector<8x1xf32>
      tpu.vector_store %arg9[%c0_26, %c0_27], %40 {strides = array<i32>} : memref<8x1xf32, #tpu.memory_space<vmem>>, vector<8x1xf32>,
      %c0_28 = arith.constant 0 : index
      %c0_29 = arith.constant 0 : index
      %42 = vector.load %arg10[%c0_28, %c0_29] : memref<8x8xf32, #tpu.memory_space<vmem>>, vector<8x8xf32>
      %43 = vector.broadcast %32 : vector<8x1xf32> to vector<8x8xf32>
      %44 = arith.mulf %43, %42 : vector<8x8xf32>
      %cst_30 = arith.constant dense<0.000000e+00> : vector<8x8xf32>
      %45 = tpu.matmul %35, %26, %cst_30 {dimension_numbers = #tpu.dot_dimension_numbers<[1], [0], [0], [1], [0, 0, 1, 1], [], []>} : vector<8x8xf32>, vector<8x8xf32>, vector<8x8xf32> -> vector<8x8xf32>
      %46 = arith.addf %44, %45 : vector<8x8xf32>
      %c0_31 = arith.constant 0 : index
      %c0_32 = arith.constant 0 : index
      %47 = vector.load %arg10[%c0_31, %c0_32] : memref<8x8xf32, #tpu.memory_space<vmem>>, vector<8x8xf32>
      tpu.vector_store %arg10[%c0_31, %c0_32], %46 {strides = array<i32>} : memref<8x8xf32, #tpu.memory_space<vmem>>, vector<8x8xf32>,
      %c0_33 = arith.constant 0 : index
      %c0_34 = arith.constant 0 : index
      %48 = vector.load %arg8[%c0_33, %c0_34] : memref<8x1xf32, #tpu.memory_space<vmem>>, vector<8x1xf32>
      tpu.vector_store %arg8[%c0_33, %c0_34], %30 {strides = array<i32>} : memref<8x1xf32, #tpu.memory_space<vmem>>, vector<8x1xf32>,
    } else {
    }
    %12 = arith.cmpi sle, %3, %2 : i32
    %13 = arith.cmpi sgt, %5, %0 : i32
    %14 = arith.andi %12, %13 : i1
    %15 = arith.extui %14 : i1 to i32
    %c0_i32_6 = arith.constant 0 : i32
    %16 = arith.cmpi ne, %15, %c0_i32_6 : i32
    scf.if %16 {
      %c0 = arith.constant 0 : index
      %c0_9 = arith.constant 0 : index
      %c0_10 = arith.constant 0 : index
      %c0_11 = arith.constant 0 : index
      %20 = vector.load %arg4[%c0, %c0_9, %c0_10, %c0_11] : memref<1x1x8x8xf32, #tpu.memory_space<vmem>>, vector<1x1x8x8xf32>
      %21 = vector.shape_cast %20 : vector<1x1x8x8xf32> to vector<8x8xf32>
      %c0_12 = arith.constant 0 : index
      %c0_13 = arith.constant 0 : index
      %c0_14 = arith.constant 0 : index
      %c0_15 = arith.constant 0 : index
      %22 = vector.load %arg5[%c0_12, %c0_13, %c0_14, %c0_15] : memref<1x1x8x8xf32, #tpu.memory_space<vmem>>, vector<1x1x8x8xf32>
      %23 = vector.shape_cast %22 : vector<1x1x8x8xf32> to vector<8x8xf32>
      %cst = arith.constant dense<0.000000e+00> : vector<8x8xf32>
      %24 = tpu.matmul %21, %23, %cst {dimension_numbers = #tpu.dot_dimension_numbers<[1], [1], [0], [0], [0, 0, 1, 0], [], []>} : vector<8x8xf32>, vector<8x8xf32>, vector<8x8xf32> -> vector<8x8xf32>
      %25 = tpu.iota {dimensions = array<i32: 0>} : vector<8x8xi32>
      %26 = vector.broadcast %0 : i32 to vector<8x8xi32>
      %27 = arith.addi %26, %25 : vector<8x8xi32>
      %28 = tpu.iota {dimensions = array<i32: 1>} : vector<8x8xi32>
      %29 = vector.broadcast %3 : i32 to vector<8x8xi32>
      %30 = arith.addi %29, %28 : vector<8x8xi32>
      %31 = arith.cmpi sle, %30, %27 : vector<8x8xi32>
      %cst_16 = arith.constant 0xFF800000 : f32
      %32 = vector.broadcast %cst_16 : f32 to vector<8x8xf32>
      %33 = arith.select %31, %24, %32 : vector<8x8xi1>, vector<8x8xf32>
      %c0_17 = arith.constant 0 : index
      %c0_18 = arith.constant 0 : index
      %c0_19 = arith.constant 0 : index
      %c0_20 = arith.constant 0 : index
      %34 = vector.load %arg6[%c0_17, %c0_18, %c0_19, %c0_20] : memref<1x1x8x8xf32, #tpu.memory_space<vmem>>, vector<1x1x8x8xf32>
      %35 = vector.shape_cast %34 : vector<1x1x8x8xf32> to vector<8x8xf32>
      %c0_21 = arith.constant 0 : index
      %c0_22 = arith.constant 0 : index
      %36 = vector.load %arg8[%c0_21, %c0_22] : memref<8x1xf32, #tpu.memory_space<vmem>>, vector<8x1xf32>
      %cst_23 = arith.constant dense<0xFF800000> : vector<8xf32>
      %37 = vector.multi_reduction <maximumf>, %33, %cst_23 [1] : vector<8x8xf32> to vector<8xf32>
      %38 = vector.shape_cast %37 : vector<8xf32> to vector<8x1xf32>
      %39 = arith.maximumf %36, %38 : vector<8x1xf32>
      %40 = arith.subf %36, %39 : vector<8x1xf32>
      %41 = math.exp %40 : vector<8x1xf32>
      %42 = vector.broadcast %39 : vector<8x1xf32> to vector<8x8xf32>
      %43 = arith.subf %33, %42 : vector<8x8xf32>
      %44 = math.exp %43 : vector<8x8xf32>
      %c0_24 = arith.constant 0 : index
      %c0_25 = arith.constant 0 : index
      %45 = vector.load %arg9[%c0_24, %c0_25] : memref<8x1xf32, #tpu.memory_space<vmem>>, vector<8x1xf32>
      %46 = arith.mulf %41, %45 : vector<8x1xf32>
      %cst_26 = arith.constant dense<0.000000e+00> : vector<8xf32>
      %47 = vector.multi_reduction <add>, %44, %cst_26 [1] : vector<8x8xf32> to vector<8xf32>
      %48 = vector.shape_cast %47 : vector<8xf32> to vector<8x1xf32>
      %49 = arith.addf %46, %48 : vector<8x1xf32>
      %c0_27 = arith.constant 0 : index
      %c0_28 = arith.constant 0 : index
      %50 = vector.load %arg9[%c0_27, %c0_28] : memref<8x1xf32, #tpu.memory_space<vmem>>, vector<8x1xf32>
      tpu.vector_store %arg9[%c0_27, %c0_28], %49 {strides = array<i32>} : memref<8x1xf32, #tpu.memory_space<vmem>>, vector<8x1xf32>,
      %c0_29 = arith.constant 0 : index
      %c0_30 = arith.constant 0 : index
      %51 = vector.load %arg10[%c0_29, %c0_30] : memref<8x8xf32, #tpu.memory_space<vmem>>, vector<8x8xf32>
      %52 = vector.broadcast %41 : vector<8x1xf32> to vector<8x8xf32>
      %53 = arith.mulf %52, %51 : vector<8x8xf32>
      %cst_31 = arith.constant dense<0.000000e+00> : vector<8x8xf32>
      %54 = tpu.matmul %44, %35, %cst_31 {dimension_numbers = #tpu.dot_dimension_numbers<[1], [0], [0], [1], [0, 0, 1, 1], [], []>} : vector<8x8xf32>, vector<8x8xf32>, vector<8x8xf32> -> vector<8x8xf32>
      %55 = arith.addf %53, %54 : vector<8x8xf32>
      %c0_32 = arith.constant 0 : index
      %c0_33 = arith.constant 0 : index
      %56 = vector.load %arg10[%c0_32, %c0_33] : memref<8x8xf32, #tpu.memory_space<vmem>>, vector<8x8xf32>
      tpu.vector_store %arg10[%c0_32, %c0_33], %55 {strides = array<i32>} : memref<8x8xf32, #tpu.memory_space<vmem>>, vector<8x8xf32>,
      %c0_34 = arith.constant 0 : index
      %c0_35 = arith.constant 0 : index
      %57 = vector.load %arg8[%c0_34, %c0_35] : memref<8x1xf32, #tpu.memory_space<vmem>>, vector<8x1xf32>
      tpu.vector_store %arg8[%c0_34, %c0_35], %39 {strides = array<i32>} : memref<8x1xf32, #tpu.memory_space<vmem>>, vector<8x1xf32>,
    } else {
    }
    %c0_i32_7 = arith.constant 0 : i32
    %17 = arith.cmpi eq, %arg3, %c0_i32_7 : i32
    %18 = arith.extui %17 : i1 to i32
    %c0_i32_8 = arith.constant 0 : i32
    %19 = arith.cmpi ne, %18, %c0_i32_8 : i32
    scf.if %19 {
      %c0 = arith.constant 0 : index
      %c0_9 = arith.constant 0 : index
      %20 = vector.load %arg10[%c0, %c0_9] : memref<8x8xf32, #tpu.memory_space<vmem>>, vector<8x8xf32>
      %c0_10 = arith.constant 0 : index
      %c0_11 = arith.constant 0 : index
      %21 = vector.load %arg9[%c0_10, %c0_11] : memref<8x1xf32, #tpu.memory_space<vmem>>, vector<8x1xf32>
      %22 = tpu.reciprocal %21 {approx = true} : vector<8x1xf32> -> vector<8x1xf32>
      %23 = vector.broadcast %22 : vector<8x1xf32> to vector<8x8xf32>
      %24 = arith.mulf %20, %23 : vector<8x8xf32>
      %c0_12 = arith.constant 0 : index
      %c0_13 = arith.constant 0 : index
      %c0_14 = arith.constant 0 : index
      %c0_15 = arith.constant 0 : index
      %25 = vector.load %arg7[%c0_12, %c0_13, %c0_14, %c0_15] : memref<1x1x8x8xf32, #tpu.memory_space<vmem>>, vector<1x1x8x8xf32>
      %26 = vector.shape_cast %25 : vector<1x1x8x8xf32> to vector<8x8xf32>
      %27 = vector.shape_cast %24 : vector<8x8xf32> to vector<1x1x8x8xf32>
      tpu.vector_store %arg7[%c0_12, %c0_13, %c0_14, %c0_15], %27 {strides = array<i32>} : memref<1x1x8x8xf32, #tpu.memory_space<vmem>>, vector<1x1x8x8xf32>,
    } else {
    }
    return
  }
  func.func @transform_0(%arg0: i32, %arg1: i32, %arg2: i32, %arg3: i32) -> (i32, i32, i32, i32) {
    %c0_i32 = arith.constant 0 : i32
    %c0_i32_0 = arith.constant 0 : i32
    return %arg0, %arg1, %arg2, %c0_i32 : i32, i32, i32, i32
  }
  func.func @transform_1(%arg0: i32, %arg1: i32, %arg2: i32, %arg3: i32) -> (i32, i32, i32, i32) {
    %c0_i32 = arith.constant 0 : i32
    %c0_i32_0 = arith.constant 0 : i32
    return %arg0, %arg1, %arg3, %c0_i32 : i32, i32, i32, i32
  }
  func.func @transform_2(%arg0: i32, %arg1: i32, %arg2: i32, %arg3: i32) -> (i32, i32, i32, i32) {
    %c0_i32 = arith.constant 0 : i32
    %c0_i32_0 = arith.constant 0 : i32
    return %arg0, %arg1, %arg3, %c0_i32 : i32, i32, i32, i32
  }
  func.func @transform_3(%arg0: i32, %arg1: i32, %arg2: i32, %arg3: i32) -> (i32, i32, i32, i32) {
    %c0_i32 = arith.constant 0 : i32
    %c0_i32_0 = arith.constant 0 : i32
    return %arg0, %arg1, %arg2, %c0_i32 : i32, i32, i32, i32
  }
}

module attributes {stable_mosaic.version = 11 : i64} {
  func.func @qkv_kernel(%arg0: i32, %arg1: i32, %arg2: memref<1x8x32xf32, #tpu.memory_space<vmem>>, %arg3: memref<1x32xf32, #tpu.memory_space<vmem>>, %arg4: memref<1x32xf32, #tpu.memory_space<vmem>>, %arg5: memref<32x96xf32, #tpu.memory_space<vmem>>, %arg6: memref<1x96xf32, #tpu.memory_space<vmem>>, %arg7: memref<1x4x8x8xf32, #tpu.memory_space<vmem>>, %arg8: memref<1x4x8x8xf32, #tpu.memory_space<vmem>>, %arg9: memref<1x4x8x8xf32, #tpu.memory_space<vmem>>) attributes {dimension_semantics = [#tpu.dimension_semantics<parallel>, #tpu.dimension_semantics<parallel>], iteration_bounds = array<i64: 2, 1>, scalar_prefetch = 0 : i64, scratch_operands = 0 : i64, tpu.core_type = #tpu.core_type<tc>, window_params = [{transform_indices = @transform_0, window_bounds = array<i64: 1, 8, 32>}, {pipeline_mode = #tpu.pipeline_mode<synchronous>, transform_indices = @transform_1, window_bounds = array<i64: 1, 32>}, {pipeline_mode = #tpu.pipeline_mode<synchronous>, transform_indices = @transform_2, window_bounds = array<i64: 1, 32>}, {pipeline_mode = #tpu.pipeline_mode<synchronous>, transform_indices = @transform_3, window_bounds = array<i64: 32, 96>}, {pipeline_mode = #tpu.pipeline_mode<synchronous>, transform_indices = @transform_4, window_bounds = array<i64: 1, 96>}, {transform_indices = @transform_5, window_bounds = array<i64: 1, 4, 8, 8>}, {transform_indices = @transform_6, window_bounds = array<i64: 1, 4, 8, 8>}, {transform_indices = @transform_7, window_bounds = array<i64: 1, 4, 8, 8>}]} {
    %c0 = arith.constant 0 : index
    %c0_0 = arith.constant 0 : index
    %c0_1 = arith.constant 0 : index
    %0 = vector.load %arg2[%c0, %c0_0, %c0_1] : memref<1x8x32xf32, #tpu.memory_space<vmem>>, vector<1x8x32xf32>
    %1 = vector.shape_cast %0 : vector<1x8x32xf32> to vector<8x32xf32>
    %c0_2 = arith.constant 0 : index
    %c0_3 = arith.constant 0 : index
    %2 = vector.load %arg3[%c0_2, %c0_3] : memref<1x32xf32, #tpu.memory_space<vmem>>, vector<1x32xf32>
    %c0_4 = arith.constant 0 : index
    %c0_5 = arith.constant 0 : index
    %3 = vector.load %arg4[%c0_4, %c0_5] : memref<1x32xf32, #tpu.memory_space<vmem>>, vector<1x32xf32>
    %cst = arith.constant dense<0.000000e+00> : vector<8xf32>
    %4 = vector.multi_reduction <add>, %1, %cst [1] : vector<8x32xf32> to vector<8xf32>
    %5 = vector.shape_cast %4 : vector<8xf32> to vector<8x1xf32>
    %cst_6 = arith.constant 3.200000e+01 : f32
    %6 = vector.broadcast %cst_6 : f32 to vector<8x1xf32>
    %7 = arith.divf %5, %6 : vector<8x1xf32>
    %8 = vector.broadcast %7 : vector<8x1xf32> to vector<8x32xf32>
    %9 = arith.subf %1, %8 : vector<8x32xf32>
    %10 = arith.mulf %9, %9 : vector<8x32xf32>
    %cst_7 = arith.constant dense<0.000000e+00> : vector<8xf32>
    %11 = vector.multi_reduction <add>, %10, %cst_7 [1] : vector<8x32xf32> to vector<8xf32>
    %12 = vector.shape_cast %11 : vector<8xf32> to vector<8x1xf32>
    %cst_8 = arith.constant 3.200000e+01 : f32
    %13 = vector.broadcast %cst_8 : f32 to vector<8x1xf32>
    %14 = arith.divf %12, %13 : vector<8x1xf32>
    %15 = vector.broadcast %7 : vector<8x1xf32> to vector<8x32xf32>
    %16 = arith.subf %1, %15 : vector<8x32xf32>
    %cst_9 = arith.constant 9.99999974E-6 : f32
    %17 = vector.broadcast %cst_9 : f32 to vector<8x1xf32>
    %18 = arith.addf %14, %17 : vector<8x1xf32>
    %19 = math.rsqrt %18 : vector<8x1xf32>
    %20 = vector.broadcast %19 : vector<8x1xf32> to vector<8x32xf32>
    %21 = arith.mulf %16, %20 : vector<8x32xf32>
    %22 = vector.broadcast %2 : vector<1x32xf32> to vector<8x32xf32>
    %23 = arith.mulf %21, %22 : vector<8x32xf32>
    %24 = vector.broadcast %3 : vector<1x32xf32> to vector<8x32xf32>
    %25 = arith.addf %23, %24 : vector<8x32xf32>
    %c0_10 = arith.constant 0 : index
    %c0_11 = arith.constant 0 : index
    %26 = vector.load %arg5[%c0_10, %c0_11] : memref<32x96xf32, #tpu.memory_space<vmem>>, vector<32x96xf32>
    %cst_12 = arith.constant dense<0.000000e+00> : vector<8x96xf32>
    %27 = tpu.matmul %25, %26, %cst_12 {dimension_numbers = #tpu.dot_dimension_numbers<[1], [0], [0], [1], [0, 0, 1, 1], [], []>} : vector<8x32xf32>, vector<32x96xf32>, vector<8x96xf32> -> vector<8x96xf32>
    %c0_13 = arith.constant 0 : index
    %c0_14 = arith.constant 0 : index
    %28 = vector.load %arg6[%c0_13, %c0_14] : memref<1x96xf32, #tpu.memory_space<vmem>>, vector<1x96xf32>
    %29 = vector.broadcast %28 : vector<1x96xf32> to vector<8x96xf32>
    %30 = arith.addf %27, %29 : vector<8x96xf32>
    %31 = vector.extract_strided_slice %30 {offsets = [0, 0], sizes = [8, 8], strides = [1, 1]} : vector<8x96xf32> to vector<8x8xf32>
    %cst_15 = arith.constant 0.353553385 : f32
    %32 = vector.broadcast %cst_15 : f32 to vector<8x8xf32>
    %33 = arith.mulf %31, %32 : vector<8x8xf32>
    %c0_16 = arith.constant 0 : index
    %c0_17 = arith.constant 0 : index
    %c0_18 = arith.constant 0 : index
    %c0_19 = arith.constant 0 : index
    %34 = vector.load %arg7[%c0_16, %c0_17, %c0_18, %c0_19] : memref<1x4x8x8xf32, #tpu.memory_space<vmem>>, vector<1x1x8x8xf32>
    %35 = vector.shape_cast %34 : vector<1x1x8x8xf32> to vector<8x8xf32>
    %36 = vector.shape_cast %33 : vector<8x8xf32> to vector<1x1x8x8xf32>
    tpu.vector_store %arg7[%c0_16, %c0_17, %c0_18, %c0_19], %36 {strides = array<i32>} : memref<1x4x8x8xf32, #tpu.memory_space<vmem>>, vector<1x1x8x8xf32>,
    %37 = vector.extract_strided_slice %30 {offsets = [0, 32], sizes = [8, 8], strides = [1, 1]} : vector<8x96xf32> to vector<8x8xf32>
    %c0_20 = arith.constant 0 : index
    %c0_21 = arith.constant 0 : index
    %c0_22 = arith.constant 0 : index
    %c0_23 = arith.constant 0 : index
    %38 = vector.load %arg8[%c0_20, %c0_21, %c0_22, %c0_23] : memref<1x4x8x8xf32, #tpu.memory_space<vmem>>, vector<1x1x8x8xf32>
    %39 = vector.shape_cast %38 : vector<1x1x8x8xf32> to vector<8x8xf32>
    %40 = vector.shape_cast %37 : vector<8x8xf32> to vector<1x1x8x8xf32>
    tpu.vector_store %arg8[%c0_20, %c0_21, %c0_22, %c0_23], %40 {strides = array<i32>} : memref<1x4x8x8xf32, #tpu.memory_space<vmem>>, vector<1x1x8x8xf32>,
    %41 = vector.extract_strided_slice %30 {offsets = [0, 64], sizes = [8, 8], strides = [1, 1]} : vector<8x96xf32> to vector<8x8xf32>
    %c0_24 = arith.constant 0 : index
    %c0_25 = arith.constant 0 : index
    %c0_26 = arith.constant 0 : index
    %c0_27 = arith.constant 0 : index
    %42 = vector.load %arg9[%c0_24, %c0_25, %c0_26, %c0_27] : memref<1x4x8x8xf32, #tpu.memory_space<vmem>>, vector<1x1x8x8xf32>
    %43 = vector.shape_cast %42 : vector<1x1x8x8xf32> to vector<8x8xf32>
    %44 = vector.shape_cast %41 : vector<8x8xf32> to vector<1x1x8x8xf32>
    tpu.vector_store %arg9[%c0_24, %c0_25, %c0_26, %c0_27], %44 {strides = array<i32>} : memref<1x4x8x8xf32, #tpu.memory_space<vmem>>, vector<1x1x8x8xf32>,
    %45 = vector.extract_strided_slice %30 {offsets = [0, 8], sizes = [8, 8], strides = [1, 1]} : vector<8x96xf32> to vector<8x8xf32>
    %cst_28 = arith.constant 0.353553385 : f32
    %46 = vector.broadcast %cst_28 : f32 to vector<8x8xf32>
    %47 = arith.mulf %45, %46 : vector<8x8xf32>
    %c0_29 = arith.constant 0 : index
    %c1 = arith.constant 1 : index
    %c0_30 = arith.constant 0 : index
    %c0_31 = arith.constant 0 : index
    %48 = vector.load %arg7[%c0_29, %c1, %c0_30, %c0_31] : memref<1x4x8x8xf32, #tpu.memory_space<vmem>>, vector<1x1x8x8xf32>
    %49 = vector.shape_cast %48 : vector<1x1x8x8xf32> to vector<8x8xf32>
    %50 = vector.shape_cast %47 : vector<8x8xf32> to vector<1x1x8x8xf32>
    tpu.vector_store %arg7[%c0_29, %c1, %c0_30, %c0_31], %50 {strides = array<i32>} : memref<1x4x8x8xf32, #tpu.memory_space<vmem>>, vector<1x1x8x8xf32>,
    %51 = vector.extract_strided_slice %30 {offsets = [0, 40], sizes = [8, 8], strides = [1, 1]} : vector<8x96xf32> to vector<8x8xf32>
    %c0_32 = arith.constant 0 : index
    %c1_33 = arith.constant 1 : index
    %c0_34 = arith.constant 0 : index
    %c0_35 = arith.constant 0 : index
    %52 = vector.load %arg8[%c0_32, %c1_33, %c0_34, %c0_35] : memref<1x4x8x8xf32, #tpu.memory_space<vmem>>, vector<1x1x8x8xf32>
    %53 = vector.shape_cast %52 : vector<1x1x8x8xf32> to vector<8x8xf32>
    %54 = vector.shape_cast %51 : vector<8x8xf32> to vector<1x1x8x8xf32>
    tpu.vector_store %arg8[%c0_32, %c1_33, %c0_34, %c0_35], %54 {strides = array<i32>} : memref<1x4x8x8xf32, #tpu.memory_space<vmem>>, vector<1x1x8x8xf32>,
    %55 = vector.extract_strided_slice %30 {offsets = [0, 72], sizes = [8, 8], strides = [1, 1]} : vector<8x96xf32> to vector<8x8xf32>
    %c0_36 = arith.constant 0 : index
    %c1_37 = arith.constant 1 : index
    %c0_38 = arith.constant 0 : index
    %c0_39 = arith.constant 0 : index
    %56 = vector.load %arg9[%c0_36, %c1_37, %c0_38, %c0_39] : memref<1x4x8x8xf32, #tpu.memory_space<vmem>>, vector<1x1x8x8xf32>
    %57 = vector.shape_cast %56 : vector<1x1x8x8xf32> to vector<8x8xf32>
    %58 = vector.shape_cast %55 : vector<8x8xf32> to vector<1x1x8x8xf32>
    tpu.vector_store %arg9[%c0_36, %c1_37, %c0_38, %c0_39], %58 {strides = array<i32>} : memref<1x4x8x8xf32, #tpu.memory_space<vmem>>, vector<1x1x8x8xf32>,
    %59 = vector.extract_strided_slice %30 {offsets = [0, 16], sizes = [8, 8], strides = [1, 1]} : vector<8x96xf32> to vector<8x8xf32>
    %cst_40 = arith.constant 0.353553385 : f32
    %60 = vector.broadcast %cst_40 : f32 to vector<8x8xf32>
    %61 = arith.mulf %59, %60 : vector<8x8xf32>
    %c0_41 = arith.constant 0 : index
    %c2 = arith.constant 2 : index
    %c0_42 = arith.constant 0 : index
    %c0_43 = arith.constant 0 : index
    %62 = vector.load %arg7[%c0_41, %c2, %c0_42, %c0_43] : memref<1x4x8x8xf32, #tpu.memory_space<vmem>>, vector<1x1x8x8xf32>
    %63 = vector.shape_cast %62 : vector<1x1x8x8xf32> to vector<8x8xf32>
    %64 = vector.shape_cast %61 : vector<8x8xf32> to vector<1x1x8x8xf32>
    tpu.vector_store %arg7[%c0_41, %c2, %c0_42, %c0_43], %64 {strides = array<i32>} : memref<1x4x8x8xf32, #tpu.memory_space<vmem>>, vector<1x1x8x8xf32>,
    %65 = vector.extract_strided_slice %30 {offsets = [0, 48], sizes = [8, 8], strides = [1, 1]} : vector<8x96xf32> to vector<8x8xf32>
    %c0_44 = arith.constant 0 : index
    %c2_45 = arith.constant 2 : index
    %c0_46 = arith.constant 0 : index
    %c0_47 = arith.constant 0 : index
    %66 = vector.load %arg8[%c0_44, %c2_45, %c0_46, %c0_47] : memref<1x4x8x8xf32, #tpu.memory_space<vmem>>, vector<1x1x8x8xf32>
    %67 = vector.shape_cast %66 : vector<1x1x8x8xf32> to vector<8x8xf32>
    %68 = vector.shape_cast %65 : vector<8x8xf32> to vector<1x1x8x8xf32>
    tpu.vector_store %arg8[%c0_44, %c2_45, %c0_46, %c0_47], %68 {strides = array<i32>} : memref<1x4x8x8xf32, #tpu.memory_space<vmem>>, vector<1x1x8x8xf32>,
    %69 = vector.extract_strided_slice %30 {offsets = [0, 80], sizes = [8, 8], strides = [1, 1]} : vector<8x96xf32> to vector<8x8xf32>
    %c0_48 = arith.constant 0 : index
    %c2_49 = arith.constant 2 : index
    %c0_50 = arith.constant 0 : index
    %c0_51 = arith.constant 0 : index
    %70 = vector.load %arg9[%c0_48, %c2_49, %c0_50, %c0_51] : memref<1x4x8x8xf32, #tpu.memory_space<vmem>>, vector<1x1x8x8xf32>
    %71 = vector.shape_cast %70 : vector<1x1x8x8xf32> to vector<8x8xf32>
    %72 = vector.shape_cast %69 : vector<8x8xf32> to vector<1x1x8x8xf32>
    tpu.vector_store %arg9[%c0_48, %c2_49, %c0_50, %c0_51], %72 {strides = array<i32>} : memref<1x4x8x8xf32, #tpu.memory_space<vmem>>, vector<1x1x8x8xf32>,
    %73 = vector.extract_strided_slice %30 {offsets = [0, 24], sizes = [8, 8], strides = [1, 1]} : vector<8x96xf32> to vector<8x8xf32>
    %cst_52 = arith.constant 0.353553385 : f32
    %74 = vector.broadcast %cst_52 : f32 to vector<8x8xf32>
    %75 = arith.mulf %73, %74 : vector<8x8xf32>
    %c0_53 = arith.constant 0 : index
    %c3 = arith.constant 3 : index
    %c0_54 = arith.constant 0 : index
    %c0_55 = arith.constant 0 : index
    %76 = vector.load %arg7[%c0_53, %c3, %c0_54, %c0_55] : memref<1x4x8x8xf32, #tpu.memory_space<vmem>>, vector<1x1x8x8xf32>
    %77 = vector.shape_cast %76 : vector<1x1x8x8xf32> to vector<8x8xf32>
    %78 = vector.shape_cast %75 : vector<8x8xf32> to vector<1x1x8x8xf32>
    tpu.vector_store %arg7[%c0_53, %c3, %c0_54, %c0_55], %78 {strides = array<i32>} : memref<1x4x8x8xf32, #tpu.memory_space<vmem>>, vector<1x1x8x8xf32>,
    %79 = vector.extract_strided_slice %30 {offsets = [0, 56], sizes = [8, 8], strides = [1, 1]} : vector<8x96xf32> to vector<8x8xf32>
    %c0_56 = arith.constant 0 : index
    %c3_57 = arith.constant 3 : index
    %c0_58 = arith.constant 0 : index
    %c0_59 = arith.constant 0 : index
    %80 = vector.load %arg8[%c0_56, %c3_57, %c0_58, %c0_59] : memref<1x4x8x8xf32, #tpu.memory_space<vmem>>, vector<1x1x8x8xf32>
    %81 = vector.shape_cast %80 : vector<1x1x8x8xf32> to vector<8x8xf32>
    %82 = vector.shape_cast %79 : vector<8x8xf32> to vector<1x1x8x8xf32>
    tpu.vector_store %arg8[%c0_56, %c3_57, %c0_58, %c0_59], %82 {strides = array<i32>} : memref<1x4x8x8xf32, #tpu.memory_space<vmem>>, vector<1x1x8x8xf32>,
    %83 = vector.extract_strided_slice %30 {offsets = [0, 88], sizes = [8, 8], strides = [1, 1]} : vector<8x96xf32> to vector<8x8xf32>
    %c0_60 = arith.constant 0 : index
    %c3_61 = arith.constant 3 : index
    %c0_62 = arith.constant 0 : index
    %c0_63 = arith.constant 0 : index
    %84 = vector.load %arg9[%c0_60, %c3_61, %c0_62, %c0_63] : memref<1x4x8x8xf32, #tpu.memory_space<vmem>>, vector<1x1x8x8xf32>
    %85 = vector.shape_cast %84 : vector<1x1x8x8xf32> to vector<8x8xf32>
    %86 = vector.shape_cast %83 : vector<8x8xf32> to vector<1x1x8x8xf32>
    tpu.vector_store %arg9[%c0_60, %c3_61, %c0_62, %c0_63], %86 {strides = array<i32>} : memref<1x4x8x8xf32, #tpu.memory_space<vmem>>, vector<1x1x8x8xf32>,
    return
  }
  func.func @transform_0(%arg0: i32, %arg1: i32) -> (i32, i32, i32) {
    %c0_i32 = arith.constant 0 : i32
    %c0_i32_0 = arith.constant 0 : i32
    return %arg0, %arg1, %c0_i32 : i32, i32, i32
  }
  func.func @transform_1(%arg0: i32, %arg1: i32) -> (i32, i32) {
    %c0_i32 = arith.constant 0 : i32
    %c0_i32_0 = arith.constant 0 : i32
    %c0_i32_1 = arith.constant 0 : i32
    return %c0_i32, %c0_i32_0 : i32, i32
  }
  func.func @transform_2(%arg0: i32, %arg1: i32) -> (i32, i32) {
    %c0_i32 = arith.constant 0 : i32
    %c0_i32_0 = arith.constant 0 : i32
    %c0_i32_1 = arith.constant 0 : i32
    return %c0_i32, %c0_i32_0 : i32, i32
  }
  func.func @transform_3(%arg0: i32, %arg1: i32) -> (i32, i32) {
    %c0_i32 = arith.constant 0 : i32
    %c0_i32_0 = arith.constant 0 : i32
    %c0_i32_1 = arith.constant 0 : i32
    return %c0_i32, %c0_i32_0 : i32, i32
  }
  func.func @transform_4(%arg0: i32, %arg1: i32) -> (i32, i32) {
    %c0_i32 = arith.constant 0 : i32
    %c0_i32_0 = arith.constant 0 : i32
    %c0_i32_1 = arith.constant 0 : i32
    return %c0_i32, %c0_i32_0 : i32, i32
  }
  func.func @transform_5(%arg0: i32, %arg1: i32) -> (i32, i32, i32, i32) {
    %c0_i32 = arith.constant 0 : i32
    %c0_i32_0 = arith.constant 0 : i32
    %c0_i32_1 = arith.constant 0 : i32
    return %arg0, %c0_i32, %arg1, %c0_i32_0 : i32, i32, i32, i32
  }
  func.func @transform_6(%arg0: i32, %arg1: i32) -> (i32, i32, i32, i32) {
    %c0_i32 = arith.constant 0 : i32
    %c0_i32_0 = arith.constant 0 : i32
    %c0_i32_1 = arith.constant 0 : i32
    return %arg0, %c0_i32, %arg1, %c0_i32_0 : i32, i32, i32, i32
  }
  func.func @transform_7(%arg0: i32, %arg1: i32) -> (i32, i32, i32, i32) {
    %c0_i32 = arith.constant 0 : i32
    %c0_i32_0 = arith.constant 0 : i32
    %c0_i32_1 = arith.constant 0 : i32
    return %arg0, %c0_i32, %arg1, %c0_i32_0 : i32, i32, i32, i32
  }
}

module attributes {stable_mosaic.version = 11 : i64} {
  func.func @head_kernel(%arg0: i32, %arg1: i32, %arg2: i32, %arg3: memref<1x8x32xf32, #tpu.memory_space<vmem>>, %arg4: memref<1x32xf32, #tpu.memory_space<vmem>>, %arg5: memref<1x32xf32, #tpu.memory_space<vmem>>, %arg6: memref<32x128xf32, #tpu.memory_space<vmem>>, %arg7: memref<1x8x128xf32, #tpu.memory_space<vmem>>, %arg8: memref<8x32xf32, #tpu.memory_space<vmem>>) attributes {dimension_semantics = [#tpu.dimension_semantics<parallel>, #tpu.dimension_semantics<parallel>, #tpu.dimension_semantics<arbitrary>], iteration_bounds = array<i64: 2, 1, 1>, scalar_prefetch = 0 : i64, scratch_operands = 1 : i64, tpu.core_type = #tpu.core_type<tc>, window_params = [{transform_indices = @transform_0, window_bounds = array<i64: 1, 8, 32>}, {pipeline_mode = #tpu.pipeline_mode<synchronous>, transform_indices = @transform_1, window_bounds = array<i64: 1, 32>}, {pipeline_mode = #tpu.pipeline_mode<synchronous>, transform_indices = @transform_2, window_bounds = array<i64: 1, 32>}, {transform_indices = @transform_3, window_bounds = array<i64: 32, 128>}, {transform_indices = @transform_4, window_bounds = array<i64: 1, 8, 128>}]} {
    %c0_i32 = arith.constant 0 : i32
    %0 = arith.cmpi eq, %arg2, %c0_i32 : i32
    %1 = arith.extui %0 : i1 to i32
    %c0_i32_0 = arith.constant 0 : i32
    %2 = arith.cmpi ne, %1, %c0_i32_0 : i32
    scf.if %2 {
      %c0_7 = arith.constant 0 : index
      %c0_8 = arith.constant 0 : index
      %c0_9 = arith.constant 0 : index
      %9 = vector.load %arg3[%c0_7, %c0_8, %c0_9] : memref<1x8x32xf32, #tpu.memory_space<vmem>>, vector<1x8x32xf32>
      %10 = vector.shape_cast %9 : vector<1x8x32xf32> to vector<8x32xf32>
      %c0_10 = arith.constant 0 : index
      %c0_11 = arith.constant 0 : index
      %11 = vector.load %arg4[%c0_10, %c0_11] : memref<1x32xf32, #tpu.memory_space<vmem>>, vector<1x32xf32>
      %c0_12 = arith.constant 0 : index
      %c0_13 = arith.constant 0 : index
      %12 = vector.load %arg5[%c0_12, %c0_13] : memref<1x32xf32, #tpu.memory_space<vmem>>, vector<1x32xf32>
      %cst_14 = arith.constant dense<0.000000e+00> : vector<8xf32>
      %13 = vector.multi_reduction <add>, %10, %cst_14 [1] : vector<8x32xf32> to vector<8xf32>
      %14 = vector.shape_cast %13 : vector<8xf32> to vector<8x1xf32>
      %cst_15 = arith.constant 3.200000e+01 : f32
      %15 = vector.broadcast %cst_15 : f32 to vector<8x1xf32>
      %16 = arith.divf %14, %15 : vector<8x1xf32>
      %17 = vector.broadcast %16 : vector<8x1xf32> to vector<8x32xf32>
      %18 = arith.subf %10, %17 : vector<8x32xf32>
      %19 = arith.mulf %18, %18 : vector<8x32xf32>
      %cst_16 = arith.constant dense<0.000000e+00> : vector<8xf32>
      %20 = vector.multi_reduction <add>, %19, %cst_16 [1] : vector<8x32xf32> to vector<8xf32>
      %21 = vector.shape_cast %20 : vector<8xf32> to vector<8x1xf32>
      %cst_17 = arith.constant 3.200000e+01 : f32
      %22 = vector.broadcast %cst_17 : f32 to vector<8x1xf32>
      %23 = arith.divf %21, %22 : vector<8x1xf32>
      %24 = vector.broadcast %16 : vector<8x1xf32> to vector<8x32xf32>
      %25 = arith.subf %10, %24 : vector<8x32xf32>
      %cst_18 = arith.constant 9.99999974E-6 : f32
      %26 = vector.broadcast %cst_18 : f32 to vector<8x1xf32>
      %27 = arith.addf %23, %26 : vector<8x1xf32>
      %28 = math.rsqrt %27 : vector<8x1xf32>
      %29 = vector.broadcast %28 : vector<8x1xf32> to vector<8x32xf32>
      %30 = arith.mulf %25, %29 : vector<8x32xf32>
      %31 = vector.broadcast %11 : vector<1x32xf32> to vector<8x32xf32>
      %32 = arith.mulf %30, %31 : vector<8x32xf32>
      %33 = vector.broadcast %12 : vector<1x32xf32> to vector<8x32xf32>
      %34 = arith.addf %32, %33 : vector<8x32xf32>
      %c0_19 = arith.constant 0 : index
      %c0_20 = arith.constant 0 : index
      %35 = vector.load %arg8[%c0_19, %c0_20] : memref<8x32xf32, #tpu.memory_space<vmem>>, vector<8x32xf32>
      tpu.vector_store %arg8[%c0_19, %c0_20], %34 {strides = array<i32>} : memref<8x32xf32, #tpu.memory_space<vmem>>, vector<8x32xf32>,
    } else {
    }
    %c0 = arith.constant 0 : index
    %c0_1 = arith.constant 0 : index
    %3 = vector.load %arg8[%c0, %c0_1] : memref<8x32xf32, #tpu.memory_space<vmem>>, vector<8x32xf32>
    %c0_2 = arith.constant 0 : index
    %c0_3 = arith.constant 0 : index
    %4 = vector.load %arg6[%c0_2, %c0_3] : memref<32x128xf32, #tpu.memory_space<vmem>>, vector<32x128xf32>
    %cst = arith.constant dense<0.000000e+00> : vector<8x128xf32>
    %5 = tpu.matmul %3, %4, %cst {dimension_numbers = #tpu.dot_dimension_numbers<[1], [0], [0], [1], [0, 0, 1, 1], [], []>} : vector<8x32xf32>, vector<32x128xf32>, vector<8x128xf32> -> vector<8x128xf32>
    %c0_4 = arith.constant 0 : index
    %c0_5 = arith.constant 0 : index
    %c0_6 = arith.constant 0 : index
    %6 = vector.load %arg7[%c0_4, %c0_5, %c0_6] : memref<1x8x128xf32, #tpu.memory_space<vmem>>, vector<1x8x128xf32>
    %7 = vector.shape_cast %6 : vector<1x8x128xf32> to vector<8x128xf32>
    %8 = vector.shape_cast %5 : vector<8x128xf32> to vector<1x8x128xf32>
    tpu.vector_store %arg7[%c0_4, %c0_5, %c0_6], %8 {strides = array<i32>} : memref<1x8x128xf32, #tpu.memory_space<vmem>>, vector<1x8x128xf32>,
    return
  }
  func.func @transform_0(%arg0: i32, %arg1: i32, %arg2: i32) -> (i32, i32, i32) {
    %c0_i32 = arith.constant 0 : i32
    %c0_i32_0 = arith.constant 0 : i32
    return %arg0, %arg1, %c0_i32 : i32, i32, i32
  }
  func.func @transform_1(%arg0: i32, %arg1: i32, %arg2: i32) -> (i32, i32) {
    %c0_i32 = arith.constant 0 : i32
    %c0_i32_0 = arith.constant 0 : i32
    %c0_i32_1 = arith.constant 0 : i32
    return %c0_i32, %c0_i32_0 : i32, i32
  }
  func.func @transform_2(%arg0: i32, %arg1: i32, %arg2: i32) -> (i32, i32) {
    %c0_i32 = arith.constant 0 : i32
    %c0_i32_0 = arith.constant 0 : i32
    %c0_i32_1 = arith.constant 0 : i32
    return %c0_i32, %c0_i32_0 : i32, i32
  }
  func.func @transform_3(%arg0: i32, %arg1: i32, %arg2: i32) -> (i32, i32) {
    %c0_i32 = arith.constant 0 : i32
    %c0_i32_0 = arith.constant 0 : i32
    return %c0_i32, %arg2 : i32, i32
  }
  func.func @transform_4(%arg0: i32, %arg1: i32, %arg2: i32) -> (i32, i32, i32) {
    %c0_i32 = arith.constant 0 : i32
    return %arg0, %arg1, %arg2 : i32, i32, i32
  }
}

</mosaic_0001>

<bundles_post_ra>
// kernel: transformer_forward.11
= control target key start
LH: loop header
LB: loop body
LE: loop exit
PB: predicated region body
PF: predicated region fallthrough
CT: control target
= control target key end

     0   :  { %s557_s15 = smov 0   ;;  %s559_s16 = smov 0   ;;  %s608_s0 = inlined_call_operand.vmem [shape: f32[2,8,32], index: 0, kind: input, shape index: {}]   ;;  %s609_s1 = inlined_call_operand.vmem [shape: f32[2,4,8,8], index: 1, kind: input, shape index: {}]   ;;  %s610_s2 = inlined_call_operand.vmem [shape: f32[32,32], index: 2, kind: input, shape index: {}]   ;;  %s611_s3 = inlined_call_operand.vmem [shape: f32[1,32], index: 3, kind: input, shape index: {}]   ;;  %s612_s4 = inlined_call_operand.vmem [shape: f32[2,8,32], index: 4, kind: output, shape index: {}]  }
   0x1   :  { %s561_s17 = smov 0  }
   0x2 LB: > { %s26_s18 = sadd.s32 1, %s526_s16  ;;  %p468_p0 = scmp.ge.s32.totalorder %s530_s17, 1  ;;  %s530_s17 = sphi %s561_s17, %s14_s17   ;;  %s526_s16 = sphi %s559_s16, %s614_s16   ;;  %s522_s15 = sphi %s557_s15, %s613_s15  }
   0x3   : > { %p28_p1 = scmp.ge.s32.totalorder %s26_s18, 2  ;;  %p195_p2 = scmp.lt.s32.totalorder %s530_s17, 3 }
   0x5   : > { %s616_s18 = smov (%p28_p1, %s26_s18), 0  ;;  %p196_p3 = pnand %p468_p0, %p195_p2 }
   0x6   : > { %p233_p4 = scmp.lt.s32.totalorder (!%p196_p3), %s522_s15, 1 }
   0x7   : > { %199 = sbr.rel (%p196_p3) target bundleno = 155 (0x9b), region = 36 }
   0xc   : > { %v317_v0 = vld [vmem:[%s610_s2 + $0x10] sm:$0xff]  ;;  %v262_v1 = vld [vmem:[%s610_s2] sm:$0xff]  ;;  %v344_v2 = vld [vmem:[%s610_s2 + $0x18] sm:$0xff]  ;;  %s618_s15 = smov (!%p233_p4, %s522_s15), 1  ;;  %vm263_vm0 = vcmask 64512   ;;  %vm370_vm1 = vcmask 261120  }
   0xd   : > { %336 = vmatpush.msra.mxu2 %v317_v0  ;;  %282 = vmatpush.msra.mxu0 %v262_v1  ;;  %v290_v3 = vld [vmem:[%s610_s2 + $0x8] sm:$0xff]  ;;  %s482_s27 = sshll.u32 %s618_s15, 5  ;;  %v507_v8 = vld [vmem:[%s611_s3] ss:$0 sm:$0xff]  ;;  %s469_s7 = sshll.u32 %s618_s15, 3 }
   0xe   : > { %363 = vmatpush.msra.mxu3 %v344_v2  ;;  %309 = vmatpush.msra.mxu1 %v290_v3  ;;  %s247_s30 = scalar_lea.vmem %s609_s1, %s482_s27  ;;  %s239_s10 = scalar_lea.vmem %s608_s0, %s469_s7 }
   0xf   : > { %v476_v4 = vld [vmem:[%s247_s30 + $0x10] sm:$0xff]  ;;  %v261_v5 = vld [vmem:[%s247_s30] sm:$0xff]  ;;  %v478_v6 = vld [vmem:[%s247_s30 + $0x18] sm:$0xff]  ;;  %s254_s13 = scalar_lea.vmem %s612_s4, %s469_s7 }
  0x10   : > { %477 = vmatmul.msk.f32.vlgmr.msra.gmra.mxu2 %vm263_vm0, %v476_v4  ;;  %473 = vmatmul.msk.f32.vlgmr.msra.gmra.mxu0 %vm263_vm0, %v261_v5  ;;  %v474_v7 = vld [vmem:[%s247_s30 + $0x8] sm:$0xff]  ;;  %v255_v16 = vld [vmem:[%s239_s10] sm:$0xff] }
  0x11   : > { %479 = vmatmul.msk.f32.vlgmr.msra.gmra.mxu3 %vm263_vm0, %v478_v6  ;;  %475 = vmatmul.msk.f32.vlgmr.msra.gmra.mxu1 %vm263_vm0, %v474_v7 }
  0x8d   : > { %v284_v9 = vpop.f32.mrf.mxu0 }
  0x8e   : > { %v287_v10 = vadd.f32 %v507_v8, %v284_v9  ;;  %v311_v11 = vpop.f32.mrf.mxu1 }
  0x90   : > { %v314_v12 = vadd.f32 %v311_v11, %v287_v10 }
  0x93   : > { %v338_v13 = vpop.f32.mrf.mxu2 }
  0x94   : > { %v341_v14 = vadd.f32 %v338_v13, %v314_v12  ;;  %v365_v15 = vpop.f32.mrf.mxu3 }
  0x96   : > { %v368_v17 = vadd.f32 %v365_v15, %v341_v14 }
  0x98   : > { %v369_v18 = vadd.f32 %v368_v17, %v255_v16 }
  0x9a   : > { %371 = vst.msk [vmem:[%s254_s13] sm:$0xff] %vm370_vm1, %v369_v18 }
  0x9b PF: > { %s14_s17 = sadd.s32 1, %s530_s17   ;;  %s613_s15 = smov %s526_s16 }
  0x9c   : > { %p11_p5 = scmp.ge.s32.totalorder %s14_s17, 4   ;;  %s614_s16 = smov %s616_s18 }
  0x9e   :  { %13 = sbr.rel (!%p11_p5) target bundleno = 2 (0x2), region = 72 }

// kernel: transformer_forward.12
= control target key start
LH: loop header
LB: loop body
LE: loop exit
PB: predicated region body
PF: predicated region fallthrough
CT: control target
= control target key end

     0   :  { %s613_s24 = smov 0   ;;  %s615_s25 = smov 0   ;;  %s734_s0 = inlined_call_operand.vmem [shape: f32[2,8,32], index: 0, kind: input, shape index: {}]   ;;  %s735_s1 = inlined_call_operand.vmem [shape: f32[1,32], index: 1, kind: input, shape index: {}]   ;;  %s736_s2 = inlined_call_operand.vmem [shape: f32[1,32], index: 2, kind: input, shape index: {}]   ;;  %s737_s3 = inlined_call_operand.vmem [shape: f32[32,128], index: 3, kind: input, shape index: {}]   ;;  %s738_s4 = inlined_call_operand.vmem [shape: f32[1,128], index: 4, kind: input, shape index: {}]   ;;  %s739_s5 = inlined_call_operand.vmem [shape: f32[128,32], index: 5, kind: input, shape index: {}]   ;;  %s740_s6 = inlined_call_operand.vmem [shape: f32[1,32], index: 6, kind: input, shape index: {}]   ;;  %s741_s7 = inlined_call_operand.vmem [shape: f32[2,8,32], index: 7, kind: output, shape index: {}]  }
   0x1   :  { %s617_s26 = smov 0  }
   0x2 LB: > { %s29_s27 = sadd.s32 1, %s566_s25  ;;  %p507_p0 = scmp.ge.s32.totalorder %s570_s26, 1  ;;  %s570_s26 = sphi %s617_s26, %s17_s26   ;;  %s566_s25 = sphi %s615_s25, %s743_s25   ;;  %s562_s24 = sphi %s613_s24, %s742_s24  }
   0x3   : > { %p31_p1 = scmp.ge.s32.totalorder %s29_s27, 2  ;;  %p255_p2 = scmp.lt.s32.totalorder %s570_s26, 3 }
   0x5   : > { %s745_s27 = smov (%p31_p1, %s29_s27), 0  ;;  %p256_p3 = pnand %p507_p0, %p255_p2 }
   0x6   : > { %p291_p4 = scmp.lt.s32.totalorder (!%p256_p3), %s562_s24, 1 }
   0x7   : > { %259 = sbr.rel (%p256_p3) target bundleno = 564 (0x234), region = 48 }
   0xc   : > { %s747_s24 = smov (!%p291_p4, %s562_s24), 1  ;;  %vm308_vm0 = vcmask 261120   ;;  %v572_v2 = vmov 32.0   ;;  %v349_v14 = vld [vmem:[%s737_s3 + $0x18] sm:$0xff]  ;;  %v348_v15 = vld [vmem:[%s737_s3 + $0x10] sm:$0xff]  ;;  %v347_v16 = vld [vmem:[%s737_s3 + $0x8] sm:$0xff] }
   0xd   : > { %s508_s28 = sshll.u32 %s747_s24, 3  ;;  %542 = vrcp.f32 %v572_v2  ;;  %369 = vmatpush.msra.mxu0 %v349_v14  ;;  %v346_v17 = vld [vmem:[%s737_s3] sm:$0xff]  ;;  %v401_v18 = vld [vmem:[%s739_s5 + $0x78] sm:$0xff]  ;;  %v400_v19 = vld [vmem:[%s739_s5 + $0x70] sm:$0xff] }
   0xe   : > { %s297_s8 = scalar_lea.vmem %s734_s0, %s508_s28  ;;  %402 = vmatpush.msra.mxu1 %v401_v18  ;;  %v399_v20 = vld [vmem:[%s739_s5 + $0x68] sm:$0xff]  ;;  %v398_v23 = vld [vmem:[%s739_s5 + $0x60] sm:$0xff]  ;;  %v397_v37 = vld [vmem:[%s739_s5 + $0x58] sm:$0xff]  ;;  %s304_s23 = scalar_lea.vmem %s741_s7, %s508_s28 }
   0xf   : > { %v639_v0 = vld [vmem:[%s297_s8] sm:$0xff]  ;;  %370 = vmatpush.msra.mxu0 %v348_v15  ;;  %v396_v38 = vld [vmem:[%s739_s5 + $0x50] sm:$0xff]  ;;  %v395_v39 = vld [vmem:[%s739_s5 + $0x48] sm:$0xff] }
  0x10   : > { %v309_v1 = vsel %vm308_vm0, %v639_v0, 0.0  ;;  %403 = vmatpush.msra.mxu1 %v400_v19  ;;  %v538_v31 = vld [vmem:[%s735_s1] ss:$0 sm:$0xff]  ;;  %v393_v41 = vld [vmem:[%s739_s5 + $0x38] sm:$0xff]  ;;  %v392_v42 = vld [vmem:[%s739_s5 + $0x30] sm:$0xff] }
  0x11   : > { %310 = vadd.xlane.f32.xlu0 %v309_v1  ;;  %371 = vmatpush.msra.mxu0 %v347_v16  ;;  %v539_v34 = vld [vmem:[%s736_s2] ss:$0 sm:$0xff]  ;;  %v391_v43 = vld [vmem:[%s739_s5 + $0x28] sm:$0xff]  ;;  %v389_v45 = vld [vmem:[%s739_s5 + $0x18] sm:$0xff] }
  0x12   : > { %404 = vmatpush.msra.mxu1 %v399_v20  ;;  %v394_v40 = vld [vmem:[%s739_s5 + $0x40] sm:$0xff]  ;;  %v388_v46 = vld [vmem:[%s739_s5 + $0x10] sm:$0xff]  ;;  %v387_v47 = vld [vmem:[%s739_s5 + $0x8] sm:$0xff] }
  0x13   : > { %v543_v3 = vpop.eup %542  ;;  %372 = vmatpush.msra.mxu0 %v346_v17  ;;  %v390_v44 = vld [vmem:[%s739_s5 + $0x20] sm:$0xff] }
  0x14   : > { %v313_v4 = vmul.f32 32.0, %v543_v3  ;;  %vm317_vm1 = vweird.f32 %v543_v3  ;;  %405 = vmatpush.msra.mxu1 %v398_v23  ;;  %v386_v48 = vld [vmem:[%s739_s5] sm:$0xff] }
  0x15   : > { %v540_v49 = vld [vmem:[%s738_s4] ss:$0 sm:$0xff] }
  0x16   : > { %v314_v5 = vsub.f32 1.0, %v313_v4  ;;  %406 = vmatpush.msra.mxu1 %v397_v37  ;;  %v541_v61 = vld [vmem:[%s740_s6] ss:$0 sm:$0xff] }
  0x18   : > { %v315_v6 = vmul.f32 %v543_v3, %v314_v5  ;;  %407 = vmatpush.msra.mxu1 %v396_v38 }
  0x1a   : > { %v316_v7 = vadd.f32 %v543_v3, %v315_v6  ;;  %408 = vmatpush.msra.mxu1 %v395_v39 }
  0x1c   : > { %v318_v8 = vsel %vm317_vm1, %v543_v3, %v316_v7  ;;  %409 = vmatpush.msra.mxu1 %v394_v40 }
  0x1e   : > { %410 = vmatpush.msra.mxu1 %v393_v41 }
  0x20   : > { %411 = vmatpush.msra.mxu1 %v392_v42 }
  0x22   : > { %412 = vmatpush.msra.mxu1 %v391_v43 }
  0x24   : > { %413 = vmatpush.msra.mxu1 %v390_v44 }
  0x26   : > { %414 = vmatpush.msra.mxu1 %v389_v45 }
  0x28   : > { %415 = vmatpush.msra.mxu1 %v388_v46 }
  0x2a   : > { %416 = vmatpush.msra.mxu1 %v387_v47 }
  0x2c   : > { %417 = vmatpush.msra.mxu1 %v386_v48 }
  0x84   : > { %v311_v9 = vpop.xlane.xlu0 %310 }
  0x85   : > { %v319_v10 = vmul.f32 %v318_v8, %v311_v9 }
  0x87   : > { %v320_v11 = vsub.f32 %v639_v0, %v319_v10 }
  0x89   : > { %v321_v12 = vmul.f32 %v320_v11, %v320_v11 }
  0x8b   : > { %v322_v13 = vsel %vm308_vm0, %v321_v12, 0.0 }
  0x8c   : > { %323 = vadd.xlane.f32.xlu0 %v322_v13 }
  0xff   : > { %v324_v21 = vpop.xlane.xlu0 %323 }
 0x100   : > { %v325_v22 = vmul.f32 %v324_v21, %v318_v8 }
 0x102   : > { %v326_v24 = vadd.f32 1e-05, %v325_v22 }
 0x104   : > { %544 = vrsqrt.f32 %v326_v24  ;;  %vm333_vm3 = vweird.f32 %v326_v24 }
 0x10a   : > { %v545_v25 = vpop.eup %544 }
 0x10b   : > { %v328_v26 = vmul.f32 %v545_v25, %v326_v24  ;;  %vm334_vm2 = vweird.f32 %v545_v25 }
 0x10c   : > { %vm335_vm4 = vmor %vm333_vm3, %vm334_vm2 }
 0x10d   : > { %v329_v27 = vmul.f32 %v545_v25, %v328_v26 }
 0x10f   : > { %v330_v28 = vmul.f32 0.5, %v329_v27 }
 0x111   : > { %v331_v29 = vsub.f32 1.5, %v330_v28 }
 0x113   : > { %v332_v30 = vmul.f32 %v545_v25, %v331_v29 }
 0x115   : > { %v336_v32 = vsel %vm335_vm4, %v545_v25, %v332_v30 }
 0x116   : > { %v337_v33 = vmul.f32 %v336_v32, %v320_v11 }
 0x118   : > { %v341_v35 = vmul.f32 %v538_v31, %v337_v33 }
 0x11a   : > { %v345_v36 = vadd.f32 %v539_v34, %v341_v35 }
 0x11c   : > { %510 = vmatmul.msk.f32.vlgmr.msra.gmra.mxu0 %vm308_vm0, %v345_v36 }
 0x199   : > { %v374_v50 = vpop.f32.mrf.mxu0 }
 0x19a   : > { %v375_v51 = vadd.f32 %v540_v49, %v374_v50 }
 0x19c   : > { %v378_v52 = vmul.f32 %v375_v51, %v375_v51  ;;  %v377_v58 = vmul.f32 0.5, %v375_v51 }
 0x19e   : > { %v379_v53 = vmul.f32 %v378_v52, %v375_v51 }
 0x1a0   : > { %v380_v54 = vmul.f32 0.044715, %v379_v53 }
 0x1a2   : > { %v381_v55 = vadd.f32 %v380_v54, %v375_v51 }
 0x1a4   : > { %v382_v56 = vmul.f32 0.7978846, %v381_v55 }
 0x1a6   : > { %546 = vtanh.f32 %v382_v56 }
 0x1ac   : > { %v547_v57 = vpop.eup %546 }
 0x1ad   : > { %v384_v59 = vadd.f32 1.0, %v547_v57 }
 0x1af   : > { %v385_v60 = vmul.f32 %v384_v59, %v377_v58 }
 0x1b1   : > { %418 = vmatmul.f32.vlgmr.msra.gmra.mxu1 %v385_v60 }
 0x22e   : > { %v419_v62 = vpop.f32.mrf.mxu1 }
 0x22f   : > { %v422_v63 = vadd.f32 %v419_v62, %v639_v0 }
 0x231   : > { %v427_v1 = vadd.f32 %v541_v61, %v422_v63 }
 0x233   : > { %428 = vst.msk [vmem:[%s304_s23] sm:$0xff] %vm308_vm0, %v427_v1 }
 0x234 PF: > { %s17_s26 = sadd.s32 1, %s570_s26   ;;  %s742_s24 = smov %s566_s25 }
 0x235   : > { %p14_p5 = scmp.ge.s32.totalorder %s17_s26, 4   ;;  %s743_s25 = smov %s745_s27 }
 0x237   :  { %16 = sbr.rel (!%p14_p5) target bundleno = 2 (0x2), region = 78 }

// kernel: transformer_forward.9
= control target key start
LH: loop header
LB: loop body
LE: loop exit
PB: predicated region body
PF: predicated region fallthrough
CT: control target
= control target key end

     0   :  { %s798_s24 = smov 0   ;;  %s800_s25 = smov 0   ;;  %s888_s0 = inlined_call_operand.vmem [shape: f32[2,8,32], index: 0, kind: input, shape index: {}]   ;;  %s889_s1 = inlined_call_operand.vmem [shape: f32[1,32], index: 1, kind: input, shape index: {}]   ;;  %s890_s2 = inlined_call_operand.vmem [shape: f32[1,32], index: 2, kind: input, shape index: {}]   ;;  %s891_s3 = inlined_call_operand.vmem [shape: f32[32,96], index: 3, kind: input, shape index: {}]   ;;  %s892_s4 = inlined_call_operand.vmem [shape: f32[1,96], index: 4, kind: input, shape index: {}]   ;;  %s893_s5 = inlined_call_operand.vmem [shape: f32[2,4,8,8], index: 5, kind: output, shape index: {0}]   ;;  %s894_s6 = inlined_call_operand.vmem [shape: f32[2,4,8,8], index: 6, kind: output, shape index: {1}]   ;;  %s895_s7 = inlined_call_operand.vmem [shape: f32[2,4,8,8], index: 7, kind: output, shape index: {2}]  }
   0x1   :  { %s802_s26 = smov 0  }
   0x2 LB: > { %s30_s27 = sadd.s32 1, %s740_s25  ;;  %p656_p0 = scmp.ge.s32.totalorder %s744_s26, 1  ;;  %s744_s26 = sphi %s802_s26, %s18_s26   ;;  %s740_s25 = sphi %s800_s25, %s897_s25   ;;  %s736_s24 = sphi %s798_s24, %s896_s24  }
   0x3   : > { %p32_p1 = scmp.ge.s32.totalorder %s30_s27, 2  ;;  %p264_p2 = scmp.lt.s32.totalorder %s744_s26, 3 }
   0x5   : > { %s899_s27 = smov (%p32_p1, %s30_s27), 0  ;;  %p265_p3 = pnand %p656_p0, %p264_p2 }
   0x6   : > { %p317_p4 = scmp.lt.s32.totalorder (!%p265_p3), %s736_s24, 1  ;;  %s748_s9 = smov (!%p265_p3), 88  }
   0x7   : > { %268 = sbr.rel (%p265_p3) target bundleno = 561 (0x231), region = 40  ;;  %s749_s10 = smov (!%p265_p3), 96  }
   0x8   : > { %s751_s11 = smov (!%p265_p3), 64   ;;  %s752_s12 = smov (!%p265_p3), 120  }
   0x9   : > { %s753_s13 = smov (!%p265_p3), 48   ;;  %s754_s14 = smov (!%p265_p3), 104  }
   0xa   : > { %s755_s15 = smov (!%p265_p3), 112   ;;  %s756_s16 = smov (!%p265_p3), 40  }
   0xb   : > { %s757_s17 = smov (!%p265_p3), 72  }
   0xc   : > { %s901_s24 = smov (!%p317_p4, %s736_s24), 1  ;;  %vm351_vm0 = vcmask 261120   ;;  %v746_v2 = vmov 32.0   ;;  %v392_v14 = vld [vmem:[%s891_s3 + $0x18] sm:$0xff]  ;;  %v391_v15 = vld [vmem:[%s891_s3 + $0x10] sm:$0xff]  ;;  %v390_v16 = vld [vmem:[%s891_s3 + $0x8] sm:$0xff] }
   0xd   : > { %s657_s28 = sshll.u32 %s901_s24, 3  ;;  %718 = vrcp.f32 %v746_v2  ;;  %412 = vmatpush.msra.mxu0 %v392_v14  ;;  %v389_v17 = vld [vmem:[%s891_s3] sm:$0xff]  ;;  %s847_s23 = sshll.u32 %s901_s24, 5  ;;  %vm421_vm5 = vcmask 64512  }
   0xe   : > { %s323_s8 = scalar_lea.vmem %s888_s0, %s657_s28  ;;  %v715_v27 = vld [vmem:[%s889_s1] ss:$0 sm:$0xff]  ;;  %s853_s30 = scalar_lea.vmem %s893_s5, %s847_s23 }
   0xf   : > { %v348_v0 = vld [vmem:[%s323_s8] sm:$0xff]  ;;  %413 = vmatpush.msra.mxu0 %v391_v15  ;;  %s747_s8 = smov 56   ;;  %s750_s24 = smov 80  }
  0x10   : > { %v352_v1 = vsel %vm351_vm0, %v348_v0, 0.0  ;;  %v716_v30 = vld [vmem:[%s890_s2] ss:$0 sm:$0xff]  ;;  %s339_s20 = scalar_lea.vmem %s894_s6, %s847_s23  ;;  %s347_s28 = scalar_lea.vmem %s895_s7, %s847_s23 }
  0x11   : > { %353 = vadd.xlane.f32.xlu0 %v352_v1  ;;  %414 = vmatpush.msra.mxu0 %v390_v16  ;;  %v717_v33 = vld [vmem:[%s892_s4] ss:$0 sm:$0xff] }
  0x13   : > { %v719_v3 = vpop.eup %718  ;;  %415 = vmatpush.msra.mxu0 %v389_v17 }
  0x14   : > { %v356_v4 = vmul.f32 32.0, %v719_v3  ;;  %vm360_vm1 = vweird.f32 %v719_v3 }
  0x16   : > { %v357_v5 = vsub.f32 1.0, %v356_v4 }
  0x18   : > { %v358_v6 = vmul.f32 %v719_v3, %v357_v5 }
  0x1a   : > { %v359_v7 = vadd.f32 %v719_v3, %v358_v6 }
  0x1c   : > { %v361_v8 = vsel %vm360_vm1, %v719_v3, %v359_v7 }
  0x84   : > { %v354_v9 = vpop.xlane.xlu0 %353 }
  0x85   : > { %v362_v10 = vmul.f32 %v361_v8, %v354_v9 }
  0x87   : > { %v363_v11 = vsub.f32 %v348_v0, %v362_v10 }
  0x89   : > { %v364_v12 = vmul.f32 %v363_v11, %v363_v11 }
  0x8b   : > { %v365_v13 = vsel %vm351_vm0, %v364_v12, 0.0 }
  0x8c   : > { %366 = vadd.xlane.f32.xlu0 %v365_v13 }
  0xff   : > { %v367_v18 = vpop.xlane.xlu0 %366 }
 0x100   : > { %v368_v19 = vmul.f32 %v367_v18, %v361_v8 }
 0x102   : > { %v369_v20 = vadd.f32 1e-05, %v368_v19 }
 0x104   : > { %720 = vrsqrt.f32 %v369_v20  ;;  %vm376_vm3 = vweird.f32 %v369_v20 }
 0x10a   : > { %v721_v21 = vpop.eup %720 }
 0x10b   : > { %v371_v22 = vmul.f32 %v721_v21, %v369_v20  ;;  %vm377_vm2 = vweird.f32 %v721_v21 }
 0x10c   : > { %vm378_vm4 = vmor %vm376_vm3, %vm377_vm2 }
 0x10d   : > { %v372_v23 = vmul.f32 %v721_v21, %v371_v22 }
 0x10f   : > { %v373_v24 = vmul.f32 0.5, %v372_v23 }
 0x111   : > { %v374_v25 = vsub.f32 1.5, %v373_v24 }
 0x113   : > { %v375_v26 = vmul.f32 %v721_v21, %v374_v25 }
 0x115   : > { %v379_v28 = vsel %vm378_vm4, %v721_v21, %v375_v26 }
 0x116   : > { %v380_v29 = vmul.f32 %v379_v28, %v363_v11 }
 0x118   : > { %v384_v31 = vmul.f32 %v715_v27, %v380_v29 }
 0x11a   : > { %v388_v32 = vadd.f32 %v716_v30, %v384_v31 }
 0x11c   : > { %664 = vmatmul.msk.f32.vlgmr.msra.gmra.mxu0 %vm351_vm0, %v388_v32 }
 0x199   : > { %v417_v34 = vpop.f32.mrf.mxu0 }
 0x19a   : > { %v418_v35 = vadd.f32 %v717_v33, %v417_v34 }
 0x19c   : > { %443 = vrot.lane.b32.xlu0 %v418_v35, %s747_s8  ;;  %438 = vrot.lane.b32.xlu2 %v418_v35, %s748_s9  ;;  %v420_v36 = vmul.f32 0.35355338, %v418_v35 }
 0x19d   : > { %424 = vrot.lane.b32.xlu1 %v418_v35, %s749_s10 }
 0x19e   : > { %422 = vst.msk [vmem:[%s853_s30] sm:$0xff] %vm421_vm5, %v420_v36 }
 0x1a4   : > { %453 = vrot.lane.b32.xlu2 %v418_v35, %s750_s24 }
 0x1a5   : > { %428 = vrot.lane.b32.xlu1 %v418_v35, %s751_s11 }
 0x1ac   : > { %433 = vrot.lane.b32.xlu2 %v420_v36, %s752_s12 }
 0x1ad   : > { %458 = vrot.lane.b32.xlu1 %v418_v35, %s753_s13 }
 0x1b4   : > { %463 = vrot.lane.b32.xlu2 %v420_v36, %s754_s14 }
 0x1b5   : > { %448 = vrot.lane.b32.xlu1 %v420_v36, %s755_s15 }
 0x1bc   : > { %473 = vrot.lane.b32.xlu2 %v418_v35, %s756_s16 }
 0x1bd   : > { %468 = vrot.lane.b32.xlu1 %v418_v35, %s757_s17 }
 0x1f6   : > { %v439_v37 = vpop.permute.xlu2 %438 }
 0x1f7   : > { %666 = vst.msk [vmem:[%s339_s20 + $0x8] sm:$0xff] %vm421_vm5, %v439_v37 }
 0x1fe   : > { %v454_v38 = vpop.permute.xlu2 %453 }
 0x1ff   : > { %669 = vst.msk [vmem:[%s339_s20 + $0x10] sm:$0xff] %vm421_vm5, %v454_v38 }
 0x206   : > { %v434_v39 = vpop.permute.xlu2 %433 }
 0x207   : > { %665 = vst.msk [vmem:[%s853_s30 + $0x8] sm:$0xff] %vm421_vm5, %v434_v39 }
 0x20e   : > { %v444_v40 = vpop.permute.xlu0 %443  ;;  %v464_v41 = vpop.permute.xlu2 %463 }
 0x20f   : > { %667 = vst.msk [vmem:[%s347_s28 + $0x8] sm:$0xff] %vm421_vm5, %v444_v40  ;;  %v425_v42 = vpop.permute.xlu1 %424 }
 0x210   : > { %427 = vst.msk [vmem:[%s339_s20] sm:$0xff] %vm421_vm5, %v425_v42 }
 0x211   : > { %671 = vst.msk [vmem:[%s853_s30 + $0x18] sm:$0xff] %vm421_vm5, %v464_v41 }
 0x216   : > { %v474_v43 = vpop.permute.xlu2 %473 }
 0x217   : > { %v429_v44 = vpop.permute.xlu1 %428  ;;  %673 = vst.msk [vmem:[%s347_s28 + $0x18] sm:$0xff] %vm421_vm5, %v474_v43 }
 0x218   : > { %431 = vst.msk [vmem:[%s347_s28] sm:$0xff] %vm421_vm5, %v429_v44 }
 0x21f   : > { %v459_v45 = vpop.permute.xlu1 %458 }
 0x220   : > { %670 = vst.msk [vmem:[%s347_s28 + $0x10] sm:$0xff] %vm421_vm5, %v459_v45 }
 0x227   : > { %v449_v46 = vpop.permute.xlu1 %448 }
 0x228   : > { %668 = vst.msk [vmem:[%s853_s30 + $0x10] sm:$0xff] %vm421_vm5, %v449_v46 }
 0x22f   : > { %v469_v47 = vpop.permute.xlu1 %468 }
 0x230   : > { %672 = vst.msk [vmem:[%s339_s20 + $0x18] sm:$0xff] %vm421_vm5, %v469_v47 }
 0x231 PF: > { %s18_s26 = sadd.s32 1, %s744_s26   ;;  %s896_s24 = smov %s740_s25 }
 0x232   : > { %p15_p5 = scmp.ge.s32.totalorder %s18_s26, 4   ;;  %s897_s25 = smov %s899_s27 }
 0x234   :  { %17 = sbr.rel (!%p15_p5) target bundleno = 2 (0x2), region = 103 }

// kernel: transformer_forward.10
= control target key start
LH: loop header
LB: loop body
LE: loop exit
PB: predicated region body
PF: predicated region fallthrough
CT: control target
= control target key end

     0   :  { %s823_s12 = smov 0   ;;  %s825_s13 = smov 0   ;;  %s898_s0 = inlined_call_operand.vmem [shape: f32[2,4,8,8], index: 0, kind: input, shape index: {}]   ;;  %s899_s1 = inlined_call_operand.vmem [shape: f32[2,4,8,8], index: 1, kind: input, shape index: {}]   ;;  %s900_s2 = inlined_call_operand.vmem [shape: f32[2,4,8,8], index: 2, kind: input, shape index: {}]   ;;  %s901_s3 = inlined_call_operand.vmem [shape: f32[2,4,8,8], index: 3, kind: output, shape index: {}]  }
   0x1   :  { %s827_s14 = smov 0   ;;  %s829_s15 = smov 0  }
   0x2   :  { %s831_s16 = smov 0  }
   0x3 LB: > { %s35_s17 = sadd.s32 1, %s790_s14  ;;  %s39_s18 = sadd.s32 1, %s794_s15  ;;  %s798_s16 = sphi %s831_s16, %s13_s16   ;;  %s794_s15 = sphi %s829_s15, %s905_s15   ;;  %s790_s14 = sphi %s827_s14, %s904_s14   ;;  %s786_s13 = sphi %s825_s13, %s903_s13   ;;  %s782_s12 = sphi %s823_s12, %s902_s12  }
   0x4   : > { %p37_p0 = scmp.ge.s32.totalorder %s35_s17, 4  ;;  %p691_p1 = scmp.ge.s32.totalorder %s798_s16, 1 }
   0x5   : > { %p217_p2 = scmp.lt.s32.totalorder %s798_s16, 9 }
   0x6   : > { %s907_s17 = smov (%p37_p0, %s35_s17), 0  ;;  %s909_s18 = smov (!%p37_p0, %s39_s18), %s794_s15 }
   0x7   : > { %p218_p3 = pnand %p691_p1, %p217_p2  ;;  %p41_p4 = scmp.ge.s32.totalorder %s909_s18, 2 }
   0x8   : > { %p275_p5 = scmp.lt.s32.totalorder (!%p218_p3), %s786_s13, 1  ;;  %p277_p6 = scmp.lt.s32.totalorder (!%p218_p3), %s782_s12, 3 }
   0x9   : > { %s911_s18 = smov (%p41_p4, %s909_s18), 0  ;;  %221 = sbr.rel (%p218_p3) target bundleno = 623 (0x26f), region = 32 }
   0xe   : > { %s913_s13 = smov (!%p275_p5, %s786_s13), 1  ;;  %s915_s12 = smov (!%p277_p6, %s782_s12), 3  ;;  %vm330_vm0 = vcmask 64512   ;;  %vm327_vm1 = vcmask 7168   ;;  %v800_v2 = vmov -inf   ;;  %v458_v3 = vlaneseq }
   0xf   : > { %s692_s19 = sshll.u32 %s913_s13, 2  ;;  %328 = vst.msk [vmem:[#allocation2] sm:$0xff] %vm327_vm1, %v800_v2  ;;  %v801_v9 = vmov 0   ;;  %v802_v10 = vmov 0.0  }
  0x10   : > { %s283_s20 = sadd.s32 %s692_s19, %s915_s12  ;;  %v459_v4 = vshrl.u32 %v458_v3, 7  ;;  %v463_v5 = vand.u32 127, %v458_v3  ;;  %751 = vset.pattern.permute.xlu0 %v801_v9  ;;  %752 = vset.pattern.permute.xlu1 %v801_v9  ;;  %329 = vst.msk [vmem:[#allocation3] sm:$0xff] %vm327_vm1, %v802_v10 }
  0x11   : > { %s853_s21 = sshll.u32 %s283_s20, 3  ;;  %753 = vset.pattern.permute.xlu2 %v801_v9  ;;  %331 = vst.msk [vmem:[#allocation4] sm:$0xff] %vm330_vm0, %v802_v10 }
  0x12   : > { %s296_s24 = scalar_lea.vmem %s899_s1, %s853_s21  ;;  %s285_s27 = scalar_lea.vmem %s898_s0, %s853_s21  ;;  %vm466_vm2 = vcmp.le.s32.totalorder %v463_v5, %v459_v4 }
  0x13   : > { %v430_v0 = vld [vmem:[%s296_s24] sm:$0xff]  ;;  %s307_s30 = scalar_lea.vmem %s900_s2, %s853_s21  ;;  %s318_s6 = scalar_lea.vmem %s901_s3, %s853_s21 }
  0x14   : > { %703 = vmatpush.xpose.msk.msra.mxu0 %vm330_vm0, %v430_v0  ;;  %v429_v1 = vld [vmem:[%s285_s27] sm:$0xff] }
  0x15   : > { %v468_v15 = vld [vmem:[%s307_s30] sm:$0xff] }
  0x16   : > { %v469_v11 = vld [vmem:[#allocation2] sm:$0xff]  ;;  %518 = vmatpush.msra.mxu1 %v468_v15 }
  0x17   : > { %704 = vmatmul.msk.f32.vlgmr.msra.gmra.mxu0 %vm330_vm0, %v429_v1  ;;  %v485_v23 = vld [vmem:[#allocation3] sm:$0xff] }
  0x18   : > { %v493_v29 = vld [vmem:[#allocation4] sm:$0xff] }
  0x94   : > { %v455_v6 = vpop.f32.mrf.mxu0 }
  0x95   : > { %v467_v7 = vsel %vm466_vm2, %v455_v6, -inf }
  0x96   : > { %v470_v8 = vsel %vm330_vm0, %v467_v7, -inf }
  0x97   : > { %471 = vmax.xlane.f32.xlu0 %v470_v8 }
 0x10a   : > { %v472_v12 = vpop.xlane.xlu0 %471 }
 0x10b   : > { %v473_v13 = vmax.f32 %v469_v11, %v472_v12 }
 0x10d   : > { %v474_v14 = vsub.f32 %v469_v11, %v473_v13  ;;  %525 = vst.msk [vmem:[#allocation2] sm:$0xff] %vm327_vm1, %v473_v13  ;;  %479 = vperm.xlu0 %751, %v473_v13  }
 0x10f   : > { %v475_v21 = vmul.f32 1.442695, %v474_v14 }
 0x17f   : > { %v480_v16 = vpop.permute.xlu0 %479 }
 0x180   : > { %v482_v17 = vsub.f32 %v467_v7, %v480_v16 }
 0x182   : > { %v483_v18 = vmul.f32 1.442695, %v482_v17 }
 0x184   : > { %754 = vpow2.f32 %v483_v18 }
 0x185   : > { %756 = vpow2.f32 %v475_v21 }
 0x18a   : > { %v755_v19 = vpop.eup %754 }
 0x18b   : > { %705 = vmatmul.msk.f32.vlgmr.msra.gmra.mxu1 %vm330_vm0, %v755_v19  ;;  %v487_v20 = vsel %vm330_vm0, %v755_v19, 0.0  ;;  %v757_v22 = vpop.eup %756 }
 0x18c   : > { %488 = vadd.xlane.f32.xlu1 %v487_v20  ;;  %v486_v24 = vmul.f32 %v757_v22, %v485_v23 }
 0x1a5   : > { %496 = vperm.xlu1 %752, %v757_v22  }
 0x1ff   : > { %v489_v25 = vpop.xlane.xlu1 %488 }
 0x200   : > { %v490_v26 = vadd.f32 %v489_v25, %v486_v24 }
 0x202   : > { %492 = vst.msk [vmem:[#allocation3] sm:$0xff] %vm327_vm1, %v490_v26 }
 0x208   : > { %v520_v32 = vpop.f32.mrf.mxu1 }
 0x209   : > { %v530_v27 = vld [vmem:[#allocation3] sm:$0xff] }
 0x20a   : > { %758 = vrcp.f32 %v530_v27 }
 0x210   : > { %v759_v28 = vpop.eup %758 }
 0x211   : > { %534 = vperm.xlu2 %753, %v759_v28  }
 0x217   : > { %v497_v30 = vpop.permute.xlu1 %496 }
 0x218   : > { %v499_v31 = vmul.f32 %v497_v30, %v493_v29 }
 0x21a   : > { %v523_v33 = vadd.f32 %v520_v32, %v499_v31 }
 0x21c   : > { %524 = vst.msk [vmem:[#allocation4] sm:$0xff] %vm330_vm0, %v523_v33 }
 0x223   : > { %v529_v34 = vld [vmem:[#allocation4] sm:$0xff] }
 0x26b   : > { %v535_v35 = vpop.permute.xlu2 %534 }
 0x26c   : > { %v537_v36 = vmul.f32 %v535_v35, %v529_v34 }
 0x26e   : > { %539 = vst.msk [vmem:[%s318_s6] sm:$0xff] %vm330_vm0, %v537_v36 }
 0x26f PF: > { %s13_s16 = sadd.s32 1, %s798_s16   ;;  %s902_s12 = smov %s790_s14 }
 0x270   : > { %p10_p7 = scmp.ge.s32.totalorder %s13_s16, 10   ;;  %s903_s13 = smov %s794_s15 }
 0x271   : > { %s904_s14 = smov %s907_s17  ;;  %s905_s15 = smov %s911_s18 }
 0x272   :  { %12 = sbr.rel (!%p10_p7) target bundleno = 3 (0x3), region = 84 }

// kernel: transformer_forward.17
= control target key start
LH: loop header
LB: loop body
LE: loop exit
PB: predicated region body
PF: predicated region fallthrough
CT: control target
= control target key end

     0   :  { %9 = vsyncpa [#allocation4], 0  ;;  %s728_s0 = inlined_call_operand.vmem [shape: f32[2,8,32], index: 0, kind: input, shape index: {}]   ;;  %s729_s1 = inlined_call_operand.vmem [shape: f32[1,32], index: 1, kind: input, shape index: {}]   ;;  %s730_s2 = inlined_call_operand.vmem [shape: f32[1,32], index: 2, kind: input, shape index: {}]   ;;  %s731_s3 = inlined_call_operand.vmem [shape: f32[32,128], index: 3, kind: input, shape index: {}]   ;;  %s732_s4 = inlined_call_operand.hbm [shape: f32[2,8,128], index: 4, kind: output, shape index: {}]  }
   0x1   :  { %11 = vsyncpa [#allocation4 + $0x1], 0  ;;  %s609_s15 = smov 0   ;;  %s611_s16 = smov 0  }
   0x2   :  { %s613_s17 = smov 0   ;;  %s615_s18 = smov 0  }
   0x3   :  { %s617_s19 = smov 0   ;;  %s619_s20 = smov 0  }
   0x4 LB: > { %s428_s21 = sadd.s32 4294967295, %s581_s20   ;;  %s429_s22 = sadd.s32 4294967294, %s581_s20   ;;  %s581_s20 = sphi %s619_s20, %s17_s20   ;;  %s577_s19 = sphi %s617_s19, %s739_s19   ;;  %s573_s18 = sphi %s615_s18, %s738_s18   ;;  %s569_s17 = sphi %s613_s17, %s737_s17   ;;  %s565_s16 = sphi %s611_s16, %s736_s16   ;;  %s561_s15 = sphi %s609_s15, %s735_s15  }
   0x5   : > { %s36_s23 = sadd.s32 1, %s577_s19  ;;  %s143_s24 = sadd.s32 1, %s569_s17 }
   0x6   : > { %p38_p0 = scmp.ge.s32.totalorder %s36_s23, 2  ;;  %p153_p1 = scmp.ne.s32.totalorder %s569_s17, %s565_s16 }
   0x7   : > { %p154_p2 = scmp.eq.s32.totalorder %s428_s21, 1  ;;  %p159_p3 = scmp.ne.s32.totalorder %s565_s16, %s561_s15 }
   0x8   : > { %s741_s23 = smov (%p38_p0, %s36_s23), 0  ;;  %p160_p5 = scmp.eq.s32.totalorder %s429_s22, 1 }
   0x9   : > { %p649_p4 = por %p154_p2, %p153_p1  ;;  %s136_s26 = ssub.s32 %s577_s19, %s741_s23 }
   0xa   : > { %p433_p6 = scmp.ge.s32.totalorder %s581_s20, 1  ;;  %p141_p7 = scmp.eq.s32.totalorder %s136_s26, 0 }
   0xb   : > { %p656_p8 = por %p160_p5, %p159_p3  ;;  %p201_p9 = scmp.lt.s32.totalorder %s581_s20, 3 }
   0xc   : > { %s662_s28 = scalar_select %p141_p7, %s569_s17, %s143_s24  }
   0xd   : > { %p202_p10 = pnand %p433_p6, %p201_p9 }
   0xe   : > { %p233_p11 = scmp.lt.s32.totalorder (!%p202_p10), %s573_s18, 1  ;;  %s438_s6 = sshll.u32 (!%p202_p10), %s573_s18, 3 }
   0xf   : > { %205 = sbr.rel (%p202_p10) target bundleno = 430 (0x1ae), region = 36  ;;  %s333_s9 = scalar_lea.hbm (!%p202_p10), %s732_s4, %s438_s6 }
  0x10   : > { %s337_s12 = sshll.u32 (!%p202_p10), %s333_s9, 4  ;;  %s523_s24 = scalar_lea.hbm (!%p202_p10), %s732_s4, 16  ;;  %s338_s12 = int_to_ptr.hbm [resolvable:$true] %s337_s12 }
  0x11   : > { %s517_s14 = sshra.s32 (!%p202_p10), %s338_s12, 4  ;;  %s518_s14 = int_to_ptr.hbm [resolvable:$true] %s517_s14 }
  0x12   : > { %s519_s21 = scalar_lea.hbm (!%p202_p10), %s518_s14, 8  ;;  %p524_p1 = scmp.lt.s32.totalorder (!%p202_p10), %s518_s14, %s732_s4 }
  0x13   : > { %p520_p12 = scmp.ne.s32.totalorder (!%p202_p10), %s518_s14, %s519_s21  ;;  %p525_p2 = scmp.lt.s32.totalorder (!%p202_p10), %s523_s24, %s519_s21 }
  0x14   : > { %s234_s29 = scalar_select %p233_p11, %s573_s18, 1  ;;  %vm251_vm0 = vcmask 261120   ;;  %v583_v2 = vmov 32.0   ;;  %v294_v14 = vld [vmem:[%s731_s3 + $0x18] sm:$0xff]  ;;  %v293_v15 = vld [vmem:[%s731_s3 + $0x10] sm:$0xff]  ;;  %v292_v16 = vld [vmem:[%s731_s3 + $0x8] sm:$0xff] }
  0x15   : > { %499 = vrcp.f32 %v583_v2  ;;  %311 = vmatpush.msra.mxu0 %v294_v14  ;;  %v291_v19 = vld [vmem:[%s731_s3] sm:$0xff]  ;;  %p521_p13 = pnand %p520_p12, %p649_p4  ;;  %p526_p3 = por %p525_p2, %p524_p1 }
  0x16   : > { %s435_s30 = sshll.u32 %s234_s29, 3  ;;  %v497_v27 = vld [vmem:[%s729_s1] ss:$0 sm:$0xff] }
  0x17   : > { %s239_s7 = scalar_lea.vmem %s728_s0, %s435_s30  ;;  %312 = vmatpush.msra.mxu0 %v293_v15  ;;  %v498_v29 = vld [vmem:[%s730_s2] ss:$0 sm:$0xff]  ;;  %s230_s30 = sand.u32 1, %s565_s16  }
  0x18   : > { %v248_v0 = vld [vmem:[%s239_s7] sm:$0xff]  ;;  %s434_s5 = sshll.u32 %s230_s30, 3  ;;  %s321_s13 = scalar_lea.sflag [#allocation4], %s230_s30 }
  0x19   : > { %v252_v1 = vsel %vm251_vm0, %v248_v0, 0.0  ;;  %313 = vmatpush.msra.mxu0 %v292_v16  ;;  %s232_s10 = scalar_lea.vmem [#allocation3], %s434_s5  ;;  %p522_p0 = pneg %p521_p13 }
  0x1a   : > { %253 = vadd.xlane.f32.xlu0 %v252_v1  ;;  %s335_s11 = sshll.u32 %s232_s10, 4  ;;  %s336_s11 = int_to_ptr.vmem [resolvable:$true] %s335_s11 }
  0x1b   : > { %v500_v3 = vpop.eup %499  ;;  %314 = vmatpush.msra.mxu0 %v291_v19  ;;  %p527_p5 = pnand %p526_p3, %p522_p0 }
  0x1c   : > { %v256_v4 = vmul.f32 32.0, %v500_v3  ;;  %vm260_vm1 = vweird.f32 %v500_v3 }
  0x1e   : > { %v257_v5 = vsub.f32 1.0, %v256_v4 }
  0x20   : > { %v258_v6 = vmul.f32 %v500_v3, %v257_v5 }
  0x22   : > { %v259_v7 = vadd.f32 %v500_v3, %v258_v6 }
  0x24   : > { %v261_v8 = vsel %vm260_vm1, %v500_v3, %v259_v7 }
  0x8d   : > { %v254_v9 = vpop.xlane.xlu0 %253 }
  0x8e   : > { %v262_v10 = vmul.f32 %v261_v8, %v254_v9 }
  0x90   : > { %v263_v11 = vsub.f32 %v248_v0, %v262_v10 }
  0x92   : > { %v264_v12 = vmul.f32 %v263_v11, %v263_v11 }
  0x94   : > { %v265_v13 = vsel %vm251_vm0, %v264_v12, 0.0 }
  0x95   : > { %266 = vadd.xlane.f32.xlu0 %v265_v13 }
 0x108   : > { %v267_v17 = vpop.xlane.xlu0 %266 }
 0x109   : > { %v268_v18 = vmul.f32 %v267_v17, %v261_v8 }
 0x10b   : > { %v269_v20 = vadd.f32 1e-05, %v268_v18 }
 0x10d   : > { %501 = vrsqrt.f32 %v269_v20  ;;  %vm276_vm3 = vweird.f32 %v269_v20 }
 0x113   : > { %v502_v21 = vpop.eup %501 }
 0x114   : > { %v271_v22 = vmul.f32 %v502_v21, %v269_v20  ;;  %vm277_vm2 = vweird.f32 %v502_v21 }
 0x115   : > { %vm278_vm4 = vmor %vm276_vm3, %vm277_vm2 }
 0x116   : > { %v272_v23 = vmul.f32 %v502_v21, %v271_v22 }
 0x118   : > { %v273_v24 = vmul.f32 0.5, %v272_v23 }
 0x11a   : > { %v274_v25 = vsub.f32 1.5, %v273_v24 }
 0x11c   : > { %v275_v26 = vmul.f32 %v502_v21, %v274_v25 }
 0x11e   : > { %v279_v28 = vsel %vm278_vm4, %v502_v21, %v275_v26 }
 0x11f   : > { %v280_v30 = vmul.f32 %v279_v28, %v263_v11 }
 0x121   : > { %v284_v31 = vmul.f32 %v497_v27, %v280_v30 }
 0x123   : > { %v288_v32 = vadd.f32 %v498_v29, %v284_v31 }
 0x125   : > { %289 = vst.msk [vmem:[#allocation2] sm:$0xff] %vm251_vm0, %v288_v32 }
 0x12c   : > { %v290_v33 = vld [vmem:[#allocation2] sm:$0xff] }
 0x12d   : > { %436 = vmatmul.msk.f32.vlgmr.msra.gmra.mxu0 %vm251_vm0, %v290_v33 }
 0x1aa   : > { %v316_v34 = vpop.f32.mrf.mxu0 }
 0x1ab   : > { %319 = vst [vmem:[%s232_s10] sm:$0xff] %v316_v34 }
 0x1ac   : > { %530 = shalt.err (!%p527_p5)
}
 0x1ad   : > { %441 = dma.vmem_to_hbm [thread:$0]  (%p649_p4), %s336_s11, 128, %s338_s12, %s321_s13  }
 0x1ae PF: > { %p447_p6 = scmp.ge.s32.totalorder %s581_s20, 2  ;;  %s349_s30 = sand.u32 1, %s561_s15  }
 0x1af   : > { %s350_s5 = scalar_lea.sflag [#allocation4], %s349_s30 }
 0x1b0   : > { %p444_p7 = pnand %p447_p6, %p656_p8 }
 0x1b2   : > { %p445_p9 = pneg %p444_p7 }
 0x1b4   : > { %556 = dma.done.wait (%p445_p9), %s350_s5, 128  }
 0x1b5   : > { %558 = vsyncadd (%p445_p9), %s350_s5, 4294967168  ;;  %s17_s20 = sadd.s32 1, %s581_s20   ;;  %s735_s15 = smov %s565_s16 }
 0x1b6   : > { %p14_p10 = scmp.ge.s32.totalorder %s17_s20, 4   ;;  %s736_s16 = smov %s569_s17 }
 0x1b7   : > { %s737_s17 = smov %s662_s28  ;;  %s738_s18 = smov %s577_s19 }
 0x1b8   : > { %s739_s19 = smov %s741_s23  ;;  %16 = sbr.rel (!%p14_p10) target bundleno = 4 (0x4), region = 78 }
 0x1bd   :  { %356 = vsyncpa [#allocation4], 1 }
 0x1be   :  { %358 = vsyncpa [#allocation4 + $0x1], 1 }

</bundles_post_ra>
